<compile_context>
chip_gen: v6e
topology: v6e:2x2x1
jax: 0.10.0
libtpu: 0.0.40
codegen_flags: <defaults>
</compile_context>

<pallas_src>
import math
import numpy as np
import jax
import jax.numpy as jnp
from jax import lax
from jax.experimental import pallas as pl
from jax.experimental.pallas import tpu as pltpu

START_TAG = "<START>"
STOP_TAG = "<STOP>"
TAG_TO_IX = {"B": 0, "I": 1, "O": 2, START_TAG: 3, STOP_TAG: 4}


# --------------------------------------------------------------------------
# Fused gather + BiLSTM + hidden2tag + Viterbi (forward & backtrack) kernel.
# --------------------------------------------------------------------------
def _make_kernel(T, E, H, K, start_idx, stop_idx):
    E2 = 2 * E
    H2, H4, H6, H8 = 2 * H, 4 * H, 6 * H, 8 * H

    def kernel(sent_ref,             # SMEM (T,) int32 (scalar prefetch)
               wv_ref,               # (V, E)
               w_in_ref,             # (2E+1, 8H): rows [fwd E | bwd E | bias]
               w_hh_ref,             # (2H, 8H) block structured
               hc0_ref,              # (2, 2H): [h0_f|h0_b ; c0_f|c0_b]
               w_tag_ref,            # (2H+1, K): rows [w_tag.T | bias]
               tp_ref,               # (K, 2K): [:, :K]=trans[next,prev], [:, K:]=trans.T
               feats_ref, path_ref, score_ref, check_ref,
               emb_sc, hid_sc):
        # ---- in-kernel embedding gather, doubled layout [x_t | x_{T-1-t}] ----
        for t in range(T):
            row = wv_ref[pl.ds(sent_ref[t], 1), :]            # (1, E) dynamic row
            emb_sc[t:t + 1, 0:E] = row
            emb_sc[T - 1 - t:T - t, E:E2] = row
        x2 = emb_sc[...]                                       # (T, 2E)

        # ---- fused input projection: one MXU matmul for both directions ----
        # column blocks (H lanes each): [i_f|i_b|f_f|f_b|o_f|o_b|g_f|g_b]
        xp = (jnp.dot(x2, w_in_ref[0:E2, :],
                      preferred_element_type=jnp.float32)
              + w_in_ref[E2:E2 + 1, :])                        # (T, 8H)
        whh = w_hh_ref[...]                                    # (2H, 8H)

        # ---- fused BiLSTM recurrence: 1 dot + 3 EUP issues per timestep ----
        h = hc0_ref[0:1, :]                                    # (1, 2H) = [h_f|h_b]
        c = hc0_ref[1:2, :]
        for t in range(T):                                     # static unroll, T small
            g = xp[t:t + 1, :] + jnp.dot(h, whh,
                                         preferred_element_type=jnp.float32)
            sig = jax.nn.sigmoid(g[:, 0:H6])                   # [i_f|i_b|f_f|f_b|o_f|o_b]
            gg = jnp.tanh(g[:, H6:H8])                         # [g_f|g_b]
            c = sig[:, H2:H4] * c + sig[:, 0:H2] * gg
            h = sig[:, H4:H6] * jnp.tanh(c)                    # [h_f|h_b]
            hid_sc[t:t + 1, 0:H] = h[:, 0:H]                   # fwd output at time t
            hid_sc[T - 1 - t:T - t, H:H2] = h[:, H:H2]         # bwd output at time T-1-t

        # ---- hidden2tag: single (T,2H)@(2H,K) matmul ----
        feats = (jnp.dot(hid_sc[...], w_tag_ref[0:H2, :],
                         preferred_element_type=jnp.float32)
                 + w_tag_ref[H2:H2 + 1, :])                    # (T, K)
        feats_ref[...] = feats

        # ---- Viterbi forward recursion (orientation alternates each step) ----
        trans = tp_ref[:, 0:K]                                 # [next, prev]
        trans_t = tp_ref[:, K:2 * K]                           # [prev, next]
        sub_kk = lax.broadcasted_iota(jnp.int32, (K, K), 0)
        lane_kk = lax.broadcasted_iota(jnp.int32, (K, K), 1)
        sub_col = lax.broadcasted_iota(jnp.int32, (K, 1), 0)
        lane_row = lax.broadcasted_iota(jnp.int32, (1, K), 1)
        eye = sub_kk == lane_kk

        # feat columns needed by the row-oriented (odd) steps, computed OFF the
        # serial DP carry chain (no per-step relayout on the critical path).
        feat_cols = {t: jnp.sum(jnp.where(eye, feats[t:t + 1, :],
                                          jnp.float32(0.0)),
                                axis=1, keepdims=True)          # (K,1)
                     for t in range(1, T, 2)}

        fv = jnp.where(sub_col == start_idx,
                       jnp.float32(0.0), jnp.float32(-10000.0))  # (K,1) over prev
        bps = []
        for t in range(T):
            if t % 2 == 0:        # fv is a column over prev
                v = fv + trans_t                                 # (K,K)[prev,next]
                best = jnp.max(v, axis=0, keepdims=True)         # (1,K)
                bp = jnp.min(jnp.where(v >= best, sub_kk, K),
                             axis=0, keepdims=True)              # first-argmax (1,K)
                fv = best + feats[t:t + 1, :]                    # row over next
            else:                 # fv is a row over prev
                v = fv + trans                                   # (K,K)[next,prev]
                best = jnp.max(v, axis=1, keepdims=True)         # (K,1)
                bp = jnp.min(jnp.where(v >= best, lane_kk, K),
                             axis=1, keepdims=True)              # first-argmax (K,1)
                fv = best + feat_cols[t]                         # column over next
            bps.append(bp)

        if T % 2 == 0:            # final fv is a column over the last tag
            term = fv + trans_t[:, stop_idx:stop_idx + 1]        # (K,1)
            score = jnp.max(term, axis=0, keepdims=True)         # (1,1)
            cur = jnp.min(jnp.where(term >= score, sub_col, K),
                          axis=0, keepdims=True)                 # (1,1) best last tag
        else:
            term = fv + trans[stop_idx:stop_idx + 1, :]          # (1,K)
            score = jnp.max(term, axis=1, keepdims=True)
            cur = jnp.min(jnp.where(term >= score, lane_row, K),
                          axis=1, keepdims=True)
        score_ref[...] = score

        # ---- in-kernel backtracking: no dependent second launch ----
        lane_t = lax.broadcasted_iota(jnp.int32, (1, T), 1)
        path = jnp.zeros((1, T), jnp.int32)
        for t in range(T - 1, -1, -1):
            path = jnp.where(lane_t == t, cur, path)
            bp = bps[t]
            if t % 2 == 0:        # bp is a (1,K) row indexed by next tag
                cur = jnp.min(jnp.where(lane_row == cur, bp, K),
                              axis=1, keepdims=True)
            else:                 # bp is a (K,1) column indexed by next tag
                cur = jnp.min(jnp.where(sub_col == cur, bp, K),
                              axis=0, keepdims=True)
        path_ref[...] = path
        check_ref[...] = cur      # must end up at the START tag

    return kernel


def bilstm_crf_fused(sentence, params):
    T = sentence.shape[0]
    V, E = params["word_vec"].shape
    H = params["w_hh"].shape[0] // 2
    K = params["w_tag"].shape[1]
    kernel = _make_kernel(T, E, H, K, TAG_TO_IX[START_TAG], TAG_TO_IX[STOP_TAG])

    def full(shape):
        return pl.BlockSpec(shape, lambda i, s, _shape=shape: (0,) * len(_shape))

    grid_spec = pltpu.PrefetchScalarGridSpec(
        num_scalar_prefetch=1,
        grid=(1,),
        in_specs=[
            full((V, E)),
            full((2 * E + 1, 8 * H)),
            full((2 * H, 8 * H)),
            full((2, 2 * H)),
            full((2 * H + 1, K)),
            full((K, 2 * K)),
        ],
        out_specs=[full((T, K)), full((1, T)), full((1, 1)), full((1, 1))],
        scratch_shapes=[pltpu.VMEM((T, 2 * E), jnp.float32),   # gathered embeddings
                        pltpu.VMEM((T, 2 * H), jnp.float32)],  # BiLSTM hidden states
    )
    return pl.pallas_call(
        kernel,
        grid_spec=grid_spec,
        out_shape=(
            jax.ShapeDtypeStruct((T, K), jnp.float32),   # emission feats
            jax.ShapeDtypeStruct((1, T), jnp.int32),     # decoded tag path
            jax.ShapeDtypeStruct((1, 1), jnp.float32),   # viterbi path score
            jax.ShapeDtypeStruct((1, 1), jnp.int32),     # start-tag check
        ),
        compiler_params=pltpu.CompilerParams(dimension_semantics=("arbitrary",)),
    )(sentence, params["word_vec"], params["w_in"], params["w_hh"],
      params["hc0"], params["w_tag"], params["trans_pack"])


# --------------------------------------------------------------------------
# Full forward (BiLSTM_CRF.forward): returns (viterbi score, tag path)
# --------------------------------------------------------------------------
@jax.jit
def bilstm_crf_forward(sentence, params):
    feats, path, score, check = bilstm_crf_fused(sentence, params)
    return score[0, 0], path[0], check[0, 0], feats


# --------------------------------------------------------------------------
# Pure numpy references (mirror the PyTorch module)
# --------------------------------------------------------------------------
def reference_feats(sentence, raw):
    r = {k: np.asarray(v, np.float32) for k, v in raw.items()}
    emb = r["word_vec"][np.asarray(sentence)]
    H = r["whh_f"].shape[1]

    def sigmoid(x):
        return 1.0 / (1.0 + np.exp(-x))

    def run(xs, wih, whh, b, h, c):
        outs = []
        for x in xs:
            g = wih @ x + whh @ h + b
            i, f = sigmoid(g[0:H]), sigmoid(g[H:2 * H])
            gg, o = np.tanh(g[2 * H:3 * H]), sigmoid(g[3 * H:4 * H])
            c = f * c + i * gg
            h = o * np.tanh(c)
            outs.append(h)
        return np.stack(outs)

    out_f = run(emb, r["wih_f"], r["whh_f"], r["bih_f"] + r["bhh_f"],
                r["h0"][0], r["c0"][0])
    out_b = run(emb[::-1], r["wih_b"], r["whh_b"], r["bih_b"] + r["bhh_b"],
                r["h0"][1], r["c0"][1])[::-1]
    lstm_out = np.concatenate([out_f, out_b], axis=1)
    return (lstm_out @ r["w_tag"].T + r["b_tag"]).astype(np.float32)


def reference_viterbi(feats, transitions):
    K = transitions.shape[0]
    start, stop = TAG_TO_IX[START_TAG], TAG_TO_IX[STOP_TAG]
    fv = np.full((K,), -10000.0, np.float32)
    fv[start] = 0.0
    bptrs = []
    for feat in feats:
        M = transitions + fv[None, :]
        bptrs.append(M.argmax(1))
        fv = M.max(1) + feat
    terminal = fv + transitions[stop]
    best = int(terminal.argmax())
    score = float(terminal[best])
    path = [best]
    for bp in reversed(bptrs):
        best = int(bp[best])
        path.append(best)
    assert path.pop() == start
    path.reverse()
    return score, path


# --------------------------------------------------------------------------
# Parameter init (shapes from BiLSTM_CRF.__init__) + host-side packing
# --------------------------------------------------------------------------
def init_raw_params(key, vocab, E, H, K):
    keys = jax.random.split(key, 14)
    k = 1.0 / math.sqrt(H)

    def u(kk, shape):
        return jax.random.uniform(kk, shape, jnp.float32, -k, k)

    raw = dict(
        wih_f=u(keys[0], (4 * H, E)), whh_f=u(keys[1], (4 * H, H)),
        bih_f=u(keys[2], (4 * H,)), bhh_f=u(keys[3], (4 * H,)),
        wih_b=u(keys[4], (4 * H, E)), whh_b=u(keys[5], (4 * H, H)),
        bih_b=u(keys[6], (4 * H,)), bhh_b=u(keys[7], (4 * H,)),
        word_vec=jax.random.normal(keys[8], (vocab, E), jnp.float32),
        h0=jax.random.normal(keys[9], (2, H), jnp.float32),
        c0=jax.random.normal(keys[10], (2, H), jnp.float32),
    )
    kt = 1.0 / math.sqrt(2 * H)
    raw["w_tag"] = jax.random.uniform(keys[11], (K, 2 * H), jnp.float32, -kt, kt)
    raw["b_tag"] = jax.random.uniform(keys[12], (K,), jnp.float32, -kt, kt)
    trans = jax.random.normal(keys[13], (K, K), jnp.float32)
    trans = trans.at[TAG_TO_IX[START_TAG], :].set(-10000.0)
    trans = trans.at[:, TAG_TO_IX[STOP_TAG]].set(-10000.0)
    raw["transitions"] = trans
    return raw


def pack_params(raw):
    r = {k: np.asarray(v) for k, v in raw.items()}
    H = r["whh_f"].shape[1]
    E = r["wih_f"].shape[1]
    K = r["transitions"].shape[0]
    GATE = {"i": 0, "f": 1, "g": 2, "o": 3}          # PyTorch LSTM row order
    # kernel column-block layout (H lanes each):
    blocks = [("f", "i"), ("b", "i"), ("f", "f"), ("b", "f"),
              ("f", "o"), ("b", "o"), ("f", "g"), ("b", "g")]

    w_in = np.zeros((2 * E + 1, 8 * H), np.float32)
    w_hh = np.zeros((2 * H, 8 * H), np.float32)
    for blk, (d, g) in enumerate(blocks):
        cs = slice(blk * H, (blk + 1) * H)
        gs = slice(GATE[g] * H, (GATE[g] + 1) * H)
        wih = r["wih_f"] if d == "f" else r["wih_b"]
        whh = r["whh_f"] if d == "f" else r["whh_b"]
        bias = (r["bih_f"] + r["bhh_f"]) if d == "f" else (r["bih_b"] + r["bhh_b"])
        row0 = 0 if d == "f" else E
        w_in[row0:row0 + E, cs] = wih[gs].T
        w_in[2 * E, cs] = bias[gs]
        hrow0 = 0 if d == "f" else H
        w_hh[hrow0:hrow0 + H, cs] = whh[gs].T

    hc0 = np.zeros((2, 2 * H), np.float32)
    hc0[0, :H], hc0[0, H:] = r["h0"][0], r["h0"][1]
    hc0[1, :H], hc0[1, H:] = r["c0"][0], r["c0"][1]

    w_tag = np.zeros((2 * H + 1, K), np.float32)
    w_tag[:2 * H] = r["w_tag"].T
    w_tag[2 * H] = r["b_tag"]

    trans_pack = np.concatenate([r["transitions"], r["transitions"].T],
                                axis=1).astype(np.float32)

    return dict(word_vec=jnp.asarray(r["word_vec"], jnp.float32),
                w_in=jnp.asarray(w_in), w_hh=jnp.asarray(w_hh),
                hc0=jnp.asarray(hc0), w_tag=jnp.asarray(w_tag),
                trans_pack=jnp.asarray(trans_pack))


if __name__ == "__main__":
    vocab, E, hidden_dim, T = 20, 16, 32, 8
    K = len(TAG_TO_IX)
    H = hidden_dim // 2

    key = jax.random.PRNGKey(0)
    pkey, skey = jax.random.split(key)
    raw = init_raw_params(pkey, vocab, E, H, K)
    packed = pack_params(raw)
    sentence = jax.random.randint(skey, (T,), 0, vocab, dtype=jnp.int32)

    score, path, start_check, feats = bilstm_crf_forward(sentence, packed)
    jax.block_until_ready((score, path, start_check, feats))

    # 1) emission scores vs. full numpy reference (default-precision matmuls).
    feats_np = np.asarray(feats)
    ref_feats = reference_feats(np.asarray(sentence), raw)
    np.testing.assert_allclose(feats_np, ref_feats, rtol=2e-2, atol=2e-2)

    # 2) in-kernel Viterbi decode + backtrack must reproduce the reference DP
    #    exactly when run on the same (kernel-produced) emission scores.
    trans_np = np.asarray(raw["transitions"])
    vs, vp = reference_viterbi(feats_np, trans_np)
    assert [int(x) for x in np.asarray(path)] == vp
    np.testing.assert_allclose(float(score), vs, rtol=1e-5, atol=1e-3)
    assert int(start_check) == TAG_TO_IX[START_TAG]

    # 3) loose end-to-end score check against the pure numpy forward pass.
    ref_score, _ = reference_viterbi(ref_feats, trans_np)
    np.testing.assert_allclose(float(score), ref_score, rtol=0.0, atol=0.1)

    print("KERNEL_OK")
</pallas_src>

<mosaic_0001>
module attributes {stable_mosaic.version = 11 : i64} {
  func.func @kernel(%arg0: i32, %arg1: memref<8xi32, #tpu.memory_space<smem>>, %arg2: memref<20x16xf32, #tpu.memory_space<vmem>>, %arg3: memref<33x128xf32, #tpu.memory_space<vmem>>, %arg4: memref<32x128xf32, #tpu.memory_space<vmem>>, %arg5: memref<2x32xf32, #tpu.memory_space<vmem>>, %arg6: memref<33x5xf32, #tpu.memory_space<vmem>>, %arg7: memref<5x10xf32, #tpu.memory_space<vmem>>, %arg8: memref<8x5xf32, #tpu.memory_space<vmem>>, %arg9: memref<1x8xi32, #tpu.memory_space<vmem>>, %arg10: memref<1x1xf32, #tpu.memory_space<vmem>>, %arg11: memref<1x1xi32, #tpu.memory_space<vmem>>, %arg12: memref<8x32xf32, #tpu.memory_space<vmem>>, %arg13: memref<8x32xf32, #tpu.memory_space<vmem>>) attributes {dimension_semantics = [#tpu.dimension_semantics<arbitrary>], iteration_bounds = array<i64: 1>, scalar_prefetch = 1 : i64, scratch_operands = 2 : i64, tpu.core_type = #tpu.core_type<tc>, window_params = [{pipeline_mode = #tpu.pipeline_mode<synchronous>, transform_indices = @transform_0, window_bounds = array<i64: 20, 16>}, {pipeline_mode = #tpu.pipeline_mode<synchronous>, transform_indices = @transform_1, window_bounds = array<i64: 33, 128>}, {pipeline_mode = #tpu.pipeline_mode<synchronous>, transform_indices = @transform_2, window_bounds = array<i64: 32, 128>}, {pipeline_mode = #tpu.pipeline_mode<synchronous>, transform_indices = @transform_3, window_bounds = array<i64: 2, 32>}, {pipeline_mode = #tpu.pipeline_mode<synchronous>, transform_indices = @transform_4, window_bounds = array<i64: 33, 5>}, {pipeline_mode = #tpu.pipeline_mode<synchronous>, transform_indices = @transform_5, window_bounds = array<i64: 5, 10>}, {pipeline_mode = #tpu.pipeline_mode<synchronous>, transform_indices = @transform_6, window_bounds = array<i64: 8, 5>}, {pipeline_mode = #tpu.pipeline_mode<synchronous>, transform_indices = @transform_7, window_bounds = array<i64: 1, 8>}, {pipeline_mode = #tpu.pipeline_mode<synchronous>, transform_indices = @transform_8, window_bounds = array<i64: 1, 1>}, {pipeline_mode = #tpu.pipeline_mode<synchronous>, transform_indices = @transform_9, window_bounds = array<i64: 1, 1>}]} {
    %c0 = arith.constant 0 : index
    %0 = memref.load %arg1[%c0] : memref<8xi32, #tpu.memory_space<smem>>
    %1 = arith.index_cast %0 : i32 to index
    %c0_0 = arith.constant 0 : index
    %2 = vector.load %arg2[%1, %c0_0] : memref<20x16xf32, #tpu.memory_space<vmem>>, vector<1x16xf32>
    %c0_1 = arith.constant 0 : index
    %c0_2 = arith.constant 0 : index
    %3 = vector.load %arg12[%c0_1, %c0_2] : memref<8x32xf32, #tpu.memory_space<vmem>>, vector<1x16xf32>
    tpu.vector_store %arg12[%c0_1, %c0_2], %2 {strides = array<i32>} : memref<8x32xf32, #tpu.memory_space<vmem>>, vector<1x16xf32>,
    %c7 = arith.constant 7 : index
    %c16 = arith.constant 16 : index
    %4 = vector.load %arg12[%c7, %c16] : memref<8x32xf32, #tpu.memory_space<vmem>>, vector<1x16xf32>
    tpu.vector_store %arg12[%c7, %c16], %2 {strides = array<i32>} : memref<8x32xf32, #tpu.memory_space<vmem>>, vector<1x16xf32>,
    %c1 = arith.constant 1 : index
    %5 = memref.load %arg1[%c1] : memref<8xi32, #tpu.memory_space<smem>>
    %6 = arith.index_cast %5 : i32 to index
    %c0_3 = arith.constant 0 : index
    %7 = vector.load %arg2[%6, %c0_3] : memref<20x16xf32, #tpu.memory_space<vmem>>, vector<1x16xf32>
    %c1_4 = arith.constant 1 : index
    %c0_5 = arith.constant 0 : index
    %8 = vector.load %arg12[%c1_4, %c0_5] : memref<8x32xf32, #tpu.memory_space<vmem>>, vector<1x16xf32>
    tpu.vector_store %arg12[%c1_4, %c0_5], %7 {strides = array<i32>} : memref<8x32xf32, #tpu.memory_space<vmem>>, vector<1x16xf32>,
    %c6 = arith.constant 6 : index
    %c16_6 = arith.constant 16 : index
    %9 = vector.load %arg12[%c6, %c16_6] : memref<8x32xf32, #tpu.memory_space<vmem>>, vector<1x16xf32>
    tpu.vector_store %arg12[%c6, %c16_6], %7 {strides = array<i32>} : memref<8x32xf32, #tpu.memory_space<vmem>>, vector<1x16xf32>,
    %c2 = arith.constant 2 : index
    %10 = memref.load %arg1[%c2] : memref<8xi32, #tpu.memory_space<smem>>
    %11 = arith.index_cast %10 : i32 to index
    %c0_7 = arith.constant 0 : index
    %12 = vector.load %arg2[%11, %c0_7] : memref<20x16xf32, #tpu.memory_space<vmem>>, vector<1x16xf32>
    %c2_8 = arith.constant 2 : index
    %c0_9 = arith.constant 0 : index
    %13 = vector.load %arg12[%c2_8, %c0_9] : memref<8x32xf32, #tpu.memory_space<vmem>>, vector<1x16xf32>
    tpu.vector_store %arg12[%c2_8, %c0_9], %12 {strides = array<i32>} : memref<8x32xf32, #tpu.memory_space<vmem>>, vector<1x16xf32>,
    %c5 = arith.constant 5 : index
    %c16_10 = arith.constant 16 : index
    %14 = vector.load %arg12[%c5, %c16_10] : memref<8x32xf32, #tpu.memory_space<vmem>>, vector<1x16xf32>
    tpu.vector_store %arg12[%c5, %c16_10], %12 {strides = array<i32>} : memref<8x32xf32, #tpu.memory_space<vmem>>, vector<1x16xf32>,
    %c3 = arith.constant 3 : index
    %15 = memref.load %arg1[%c3] : memref<8xi32, #tpu.memory_space<smem>>
    %16 = arith.index_cast %15 : i32 to index
    %c0_11 = arith.constant 0 : index
    %17 = vector.load %arg2[%16, %c0_11] : memref<20x16xf32, #tpu.memory_space<vmem>>, vector<1x16xf32>
    %c3_12 = arith.constant 3 : index
    %c0_13 = arith.constant 0 : index
    %18 = vector.load %arg12[%c3_12, %c0_13] : memref<8x32xf32, #tpu.memory_space<vmem>>, vector<1x16xf32>
    tpu.vector_store %arg12[%c3_12, %c0_13], %17 {strides = array<i32>} : memref<8x32xf32, #tpu.memory_space<vmem>>, vector<1x16xf32>,
    %c4 = arith.constant 4 : index
    %c16_14 = arith.constant 16 : index
    %19 = vector.load %arg12[%c4, %c16_14] : memref<8x32xf32, #tpu.memory_space<vmem>>, vector<1x16xf32>
    tpu.vector_store %arg12[%c4, %c16_14], %17 {strides = array<i32>} : memref<8x32xf32, #tpu.memory_space<vmem>>, vector<1x16xf32>,
    %c4_15 = arith.constant 4 : index
    %20 = memref.load %arg1[%c4_15] : memref<8xi32, #tpu.memory_space<smem>>
    %21 = arith.index_cast %20 : i32 to index
    %c0_16 = arith.constant 0 : index
    %22 = vector.load %arg2[%21, %c0_16] : memref<20x16xf32, #tpu.memory_space<vmem>>, vector<1x16xf32>
    %c4_17 = arith.constant 4 : index
    %c0_18 = arith.constant 0 : index
    %23 = vector.load %arg12[%c4_17, %c0_18] : memref<8x32xf32, #tpu.memory_space<vmem>>, vector<1x16xf32>
    tpu.vector_store %arg12[%c4_17, %c0_18], %22 {strides = array<i32>} : memref<8x32xf32, #tpu.memory_space<vmem>>, vector<1x16xf32>,
    %c3_19 = arith.constant 3 : index
    %c16_20 = arith.constant 16 : index
    %24 = vector.load %arg12[%c3_19, %c16_20] : memref<8x32xf32, #tpu.memory_space<vmem>>, vector<1x16xf32>
    tpu.vector_store %arg12[%c3_19, %c16_20], %22 {strides = array<i32>} : memref<8x32xf32, #tpu.memory_space<vmem>>, vector<1x16xf32>,
    %c5_21 = arith.constant 5 : index
    %25 = memref.load %arg1[%c5_21] : memref<8xi32, #tpu.memory_space<smem>>
    %26 = arith.index_cast %25 : i32 to index
    %c0_22 = arith.constant 0 : index
    %27 = vector.load %arg2[%26, %c0_22] : memref<20x16xf32, #tpu.memory_space<vmem>>, vector<1x16xf32>
    %c5_23 = arith.constant 5 : index
    %c0_24 = arith.constant 0 : index
    %28 = vector.load %arg12[%c5_23, %c0_24] : memref<8x32xf32, #tpu.memory_space<vmem>>, vector<1x16xf32>
    tpu.vector_store %arg12[%c5_23, %c0_24], %27 {strides = array<i32>} : memref<8x32xf32, #tpu.memory_space<vmem>>, vector<1x16xf32>,
    %c2_25 = arith.constant 2 : index
    %c16_26 = arith.constant 16 : index
    %29 = vector.load %arg12[%c2_25, %c16_26] : memref<8x32xf32, #tpu.memory_space<vmem>>, vector<1x16xf32>
    tpu.vector_store %arg12[%c2_25, %c16_26], %27 {strides = array<i32>} : memref<8x32xf32, #tpu.memory_space<vmem>>, vector<1x16xf32>,
    %c6_27 = arith.constant 6 : index
    %30 = memref.load %arg1[%c6_27] : memref<8xi32, #tpu.memory_space<smem>>
    %31 = arith.index_cast %30 : i32 to index
    %c0_28 = arith.constant 0 : index
    %32 = vector.load %arg2[%31, %c0_28] : memref<20x16xf32, #tpu.memory_space<vmem>>, vector<1x16xf32>
    %c6_29 = arith.constant 6 : index
    %c0_30 = arith.constant 0 : index
    %33 = vector.load %arg12[%c6_29, %c0_30] : memref<8x32xf32, #tpu.memory_space<vmem>>, vector<1x16xf32>
    tpu.vector_store %arg12[%c6_29, %c0_30], %32 {strides = array<i32>} : memref<8x32xf32, #tpu.memory_space<vmem>>, vector<1x16xf32>,
    %c1_31 = arith.constant 1 : index
    %c16_32 = arith.constant 16 : index
    %34 = vector.load %arg12[%c1_31, %c16_32] : memref<8x32xf32, #tpu.memory_space<vmem>>, vector<1x16xf32>
    tpu.vector_store %arg12[%c1_31, %c16_32], %32 {strides = array<i32>} : memref<8x32xf32, #tpu.memory_space<vmem>>, vector<1x16xf32>,
    %c7_33 = arith.constant 7 : index
    %35 = memref.load %arg1[%c7_33] : memref<8xi32, #tpu.memory_space<smem>>
    %36 = arith.index_cast %35 : i32 to index
    %c0_34 = arith.constant 0 : index
    %37 = vector.load %arg2[%36, %c0_34] : memref<20x16xf32, #tpu.memory_space<vmem>>, vector<1x16xf32>
    %c7_35 = arith.constant 7 : index
    %c0_36 = arith.constant 0 : index
    %38 = vector.load %arg12[%c7_35, %c0_36] : memref<8x32xf32, #tpu.memory_space<vmem>>, vector<1x16xf32>
    tpu.vector_store %arg12[%c7_35, %c0_36], %37 {strides = array<i32>} : memref<8x32xf32, #tpu.memory_space<vmem>>, vector<1x16xf32>,
    %c0_37 = arith.constant 0 : index
    %c16_38 = arith.constant 16 : index
    %39 = vector.load %arg12[%c0_37, %c16_38] : memref<8x32xf32, #tpu.memory_space<vmem>>, vector<1x16xf32>
    tpu.vector_store %arg12[%c0_37, %c16_38], %37 {strides = array<i32>} : memref<8x32xf32, #tpu.memory_space<vmem>>, vector<1x16xf32>,
    %c0_39 = arith.constant 0 : index
    %c0_40 = arith.constant 0 : index
    %40 = vector.load %arg12[%c0_39, %c0_40] : memref<8x32xf32, #tpu.memory_space<vmem>>, vector<8x32xf32>
    %c0_41 = arith.constant 0 : index
    %c0_42 = arith.constant 0 : index
    %41 = vector.load %arg3[%c0_41, %c0_42] : memref<33x128xf32, #tpu.memory_space<vmem>>, vector<32x128xf32>
    %cst = arith.constant dense<0.000000e+00> : vector<8x128xf32>
    %42 = tpu.matmul %40, %41, %cst {dimension_numbers = #tpu.dot_dimension_numbers<[1], [0], [0], [1], [0, 0, 1, 1], [], []>} : vector<8x32xf32>, vector<32x128xf32>, vector<8x128xf32> -> vector<8x128xf32>
    %c32 = arith.constant 32 : index
    %c0_43 = arith.constant 0 : index
    %43 = vector.load %arg3[%c32, %c0_43] : memref<33x128xf32, #tpu.memory_space<vmem>>, vector<1x128xf32>
    %44 = vector.broadcast %43 : vector<1x128xf32> to vector<8x128xf32>
    %45 = arith.addf %42, %44 : vector<8x128xf32>
    %c0_44 = arith.constant 0 : index
    %c0_45 = arith.constant 0 : index
    %46 = vector.load %arg4[%c0_44, %c0_45] : memref<32x128xf32, #tpu.memory_space<vmem>>, vector<32x128xf32>
    %c0_46 = arith.constant 0 : index
    %c0_47 = arith.constant 0 : index
    %47 = vector.load %arg5[%c0_46, %c0_47] : memref<2x32xf32, #tpu.memory_space<vmem>>, vector<1x32xf32>
    %c1_48 = arith.constant 1 : index
    %c0_49 = arith.constant 0 : index
    %48 = vector.load %arg5[%c1_48, %c0_49] : memref<2x32xf32, #tpu.memory_space<vmem>>, vector<1x32xf32>
    %49 = vector.extract_strided_slice %45 {offsets = [0, 0], sizes = [1, 128], strides = [1, 1]} : vector<8x128xf32> to vector<1x128xf32>
    %cst_50 = arith.constant dense<0.000000e+00> : vector<1x128xf32>
    %50 = tpu.matmul %47, %46, %cst_50 {dimension_numbers = #tpu.dot_dimension_numbers<[1], [0], [0], [1], [0, 0, 1, 1], [], []>} : vector<1x32xf32>, vector<32x128xf32>, vector<1x128xf32> -> vector<1x128xf32>
    %51 = arith.addf %49, %50 : vector<1x128xf32>
    %52 = vector.extract_strided_slice %51 {offsets = [0, 0], sizes = [1, 96], strides = [1, 1]} : vector<1x128xf32> to vector<1x96xf32>
    %53 = arith.negf %52 : vector<1x96xf32>
    %54 = math.exp %53 : vector<1x96xf32>
    %cst_51 = arith.constant 1.000000e+00 : f32
    %55 = vector.broadcast %cst_51 : f32 to vector<1x96xf32>
    %56 = arith.addf %55, %54 : vector<1x96xf32>
    %57 = arith.divf %55, %56 : vector<1x96xf32>
    %58 = vector.extract_strided_slice %51 {offsets = [0, 96], sizes = [1, 32], strides = [1, 1]} : vector<1x128xf32> to vector<1x32xf32>
    %59 = math.tanh %58 : vector<1x32xf32>
    %60 = vector.extract_strided_slice %57 {offsets = [0, 32], sizes = [1, 32], strides = [1, 1]} : vector<1x96xf32> to vector<1x32xf32>
    %61 = arith.mulf %60, %48 : vector<1x32xf32>
    %62 = vector.extract_strided_slice %57 {offsets = [0, 0], sizes = [1, 32], strides = [1, 1]} : vector<1x96xf32> to vector<1x32xf32>
    %63 = arith.mulf %62, %59 : vector<1x32xf32>
    %64 = arith.addf %61, %63 : vector<1x32xf32>
    %65 = vector.extract_strided_slice %57 {offsets = [0, 64], sizes = [1, 32], strides = [1, 1]} : vector<1x96xf32> to vector<1x32xf32>
    %66 = math.tanh %64 : vector<1x32xf32>
    %67 = arith.mulf %65, %66 : vector<1x32xf32>
    %68 = vector.extract_strided_slice %67 {offsets = [0, 0], sizes = [1, 16], strides = [1, 1]} : vector<1x32xf32> to vector<1x16xf32>
    %c0_52 = arith.constant 0 : index
    %c0_53 = arith.constant 0 : index
    %69 = vector.load %arg13[%c0_52, %c0_53] : memref<8x32xf32, #tpu.memory_space<vmem>>, vector<1x16xf32>
    tpu.vector_store %arg13[%c0_52, %c0_53], %68 {strides = array<i32>} : memref<8x32xf32, #tpu.memory_space<vmem>>, vector<1x16xf32>,
    %70 = vector.extract_strided_slice %67 {offsets = [0, 16], sizes = [1, 16], strides = [1, 1]} : vector<1x32xf32> to vector<1x16xf32>
    %c7_54 = arith.constant 7 : index
    %c16_55 = arith.constant 16 : index
    %71 = vector.load %arg13[%c7_54, %c16_55] : memref<8x32xf32, #tpu.memory_space<vmem>>, vector<1x16xf32>
    tpu.vector_store %arg13[%c7_54, %c16_55], %70 {strides = array<i32>} : memref<8x32xf32, #tpu.memory_space<vmem>>, vector<1x16xf32>,
    %72 = vector.extract_strided_slice %45 {offsets = [1, 0], sizes = [1, 128], strides = [1, 1]} : vector<8x128xf32> to vector<1x128xf32>
    %cst_56 = arith.constant dense<0.000000e+00> : vector<1x128xf32>
    %73 = tpu.matmul %67, %46, %cst_56 {dimension_numbers = #tpu.dot_dimension_numbers<[1], [0], [0], [1], [0, 0, 1, 1], [], []>} : vector<1x32xf32>, vector<32x128xf32>, vector<1x128xf32> -> vector<1x128xf32>
    %74 = arith.addf %72, %73 : vector<1x128xf32>
    %75 = vector.extract_strided_slice %74 {offsets = [0, 0], sizes = [1, 96], strides = [1, 1]} : vector<1x128xf32> to vector<1x96xf32>
    %76 = arith.negf %75 : vector<1x96xf32>
    %77 = math.exp %76 : vector<1x96xf32>
    %cst_57 = arith.constant 1.000000e+00 : f32
    %78 = vector.broadcast %cst_57 : f32 to vector<1x96xf32>
    %79 = arith.addf %78, %77 : vector<1x96xf32>
    %80 = arith.divf %78, %79 : vector<1x96xf32>
    %81 = vector.extract_strided_slice %74 {offsets = [0, 96], sizes = [1, 32], strides = [1, 1]} : vector<1x128xf32> to vector<1x32xf32>
    %82 = math.tanh %81 : vector<1x32xf32>
    %83 = vector.extract_strided_slice %80 {offsets = [0, 32], sizes = [1, 32], strides = [1, 1]} : vector<1x96xf32> to vector<1x32xf32>
    %84 = arith.mulf %83, %64 : vector<1x32xf32>
    %85 = vector.extract_strided_slice %80 {offsets = [0, 0], sizes = [1, 32], strides = [1, 1]} : vector<1x96xf32> to vector<1x32xf32>
    %86 = arith.mulf %85, %82 : vector<1x32xf32>
    %87 = arith.addf %84, %86 : vector<1x32xf32>
    %88 = vector.extract_strided_slice %80 {offsets = [0, 64], sizes = [1, 32], strides = [1, 1]} : vector<1x96xf32> to vector<1x32xf32>
    %89 = math.tanh %87 : vector<1x32xf32>
    %90 = arith.mulf %88, %89 : vector<1x32xf32>
    %91 = vector.extract_strided_slice %90 {offsets = [0, 0], sizes = [1, 16], strides = [1, 1]} : vector<1x32xf32> to vector<1x16xf32>
    %c1_58 = arith.constant 1 : index
    %c0_59 = arith.constant 0 : index
    %92 = vector.load %arg13[%c1_58, %c0_59] : memref<8x32xf32, #tpu.memory_space<vmem>>, vector<1x16xf32>
    tpu.vector_store %arg13[%c1_58, %c0_59], %91 {strides = array<i32>} : memref<8x32xf32, #tpu.memory_space<vmem>>, vector<1x16xf32>,
    %93 = vector.extract_strided_slice %90 {offsets = [0, 16], sizes = [1, 16], strides = [1, 1]} : vector<1x32xf32> to vector<1x16xf32>
    %c6_60 = arith.constant 6 : index
    %c16_61 = arith.constant 16 : index
    %94 = vector.load %arg13[%c6_60, %c16_61] : memref<8x32xf32, #tpu.memory_space<vmem>>, vector<1x16xf32>
    tpu.vector_store %arg13[%c6_60, %c16_61], %93 {strides = array<i32>} : memref<8x32xf32, #tpu.memory_space<vmem>>, vector<1x16xf32>,
    %95 = vector.extract_strided_slice %45 {offsets = [2, 0], sizes = [1, 128], strides = [1, 1]} : vector<8x128xf32> to vector<1x128xf32>
    %cst_62 = arith.constant dense<0.000000e+00> : vector<1x128xf32>
    %96 = tpu.matmul %90, %46, %cst_62 {dimension_numbers = #tpu.dot_dimension_numbers<[1], [0], [0], [1], [0, 0, 1, 1], [], []>} : vector<1x32xf32>, vector<32x128xf32>, vector<1x128xf32> -> vector<1x128xf32>
    %97 = arith.addf %95, %96 : vector<1x128xf32>
    %98 = vector.extract_strided_slice %97 {offsets = [0, 0], sizes = [1, 96], strides = [1, 1]} : vector<1x128xf32> to vector<1x96xf32>
    %99 = arith.negf %98 : vector<1x96xf32>
    %100 = math.exp %99 : vector<1x96xf32>
    %cst_63 = arith.constant 1.000000e+00 : f32
    %101 = vector.broadcast %cst_63 : f32 to vector<1x96xf32>
    %102 = arith.addf %101, %100 : vector<1x96xf32>
    %103 = arith.divf %101, %102 : vector<1x96xf32>
    %104 = vector.extract_strided_slice %97 {offsets = [0, 96], sizes = [1, 32], strides = [1, 1]} : vector<1x128xf32> to vector<1x32xf32>
    %105 = math.tanh %104 : vector<1x32xf32>
    %106 = vector.extract_strided_slice %103 {offsets = [0, 32], sizes = [1, 32], strides = [1, 1]} : vector<1x96xf32> to vector<1x32xf32>
    %107 = arith.mulf %106, %87 : vector<1x32xf32>
    %108 = vector.extract_strided_slice %103 {offsets = [0, 0], sizes = [1, 32], strides = [1, 1]} : vector<1x96xf32> to vector<1x32xf32>
    %109 = arith.mulf %108, %105 : vector<1x32xf32>
    %110 = arith.addf %107, %109 : vector<1x32xf32>
    %111 = vector.extract_strided_slice %103 {offsets = [0, 64], sizes = [1, 32], strides = [1, 1]} : vector<1x96xf32> to vector<1x32xf32>
    %112 = math.tanh %110 : vector<1x32xf32>
    %113 = arith.mulf %111, %112 : vector<1x32xf32>
    %114 = vector.extract_strided_slice %113 {offsets = [0, 0], sizes = [1, 16], strides = [1, 1]} : vector<1x32xf32> to vector<1x16xf32>
    %c2_64 = arith.constant 2 : index
    %c0_65 = arith.constant 0 : index
    %115 = vector.load %arg13[%c2_64, %c0_65] : memref<8x32xf32, #tpu.memory_space<vmem>>, vector<1x16xf32>
    tpu.vector_store %arg13[%c2_64, %c0_65], %114 {strides = array<i32>} : memref<8x32xf32, #tpu.memory_space<vmem>>, vector<1x16xf32>,
    %116 = vector.extract_strided_slice %113 {offsets = [0, 16], sizes = [1, 16], strides = [1, 1]} : vector<1x32xf32> to vector<1x16xf32>
    %c5_66 = arith.constant 5 : index
    %c16_67 = arith.constant 16 : index
    %117 = vector.load %arg13[%c5_66, %c16_67] : memref<8x32xf32, #tpu.memory_space<vmem>>, vector<1x16xf32>
    tpu.vector_store %arg13[%c5_66, %c16_67], %116 {strides = array<i32>} : memref<8x32xf32, #tpu.memory_space<vmem>>, vector<1x16xf32>,
    %118 = vector.extract_strided_slice %45 {offsets = [3, 0], sizes = [1, 128], strides = [1, 1]} : vector<8x128xf32> to vector<1x128xf32>
    %cst_68 = arith.constant dense<0.000000e+00> : vector<1x128xf32>
    %119 = tpu.matmul %113, %46, %cst_68 {dimension_numbers = #tpu.dot_dimension_numbers<[1], [0], [0], [1], [0, 0, 1, 1], [], []>} : vector<1x32xf32>, vector<32x128xf32>, vector<1x128xf32> -> vector<1x128xf32>
    %120 = arith.addf %118, %119 : vector<1x128xf32>
    %121 = vector.extract_strided_slice %120 {offsets = [0, 0], sizes = [1, 96], strides = [1, 1]} : vector<1x128xf32> to vector<1x96xf32>
    %122 = arith.negf %121 : vector<1x96xf32>
    %123 = math.exp %122 : vector<1x96xf32>
    %cst_69 = arith.constant 1.000000e+00 : f32
    %124 = vector.broadcast %cst_69 : f32 to vector<1x96xf32>
    %125 = arith.addf %124, %123 : vector<1x96xf32>
    %126 = arith.divf %124, %125 : vector<1x96xf32>
    %127 = vector.extract_strided_slice %120 {offsets = [0, 96], sizes = [1, 32], strides = [1, 1]} : vector<1x128xf32> to vector<1x32xf32>
    %128 = math.tanh %127 : vector<1x32xf32>
    %129 = vector.extract_strided_slice %126 {offsets = [0, 32], sizes = [1, 32], strides = [1, 1]} : vector<1x96xf32> to vector<1x32xf32>
    %130 = arith.mulf %129, %110 : vector<1x32xf32>
    %131 = vector.extract_strided_slice %126 {offsets = [0, 0], sizes = [1, 32], strides = [1, 1]} : vector<1x96xf32> to vector<1x32xf32>
    %132 = arith.mulf %131, %128 : vector<1x32xf32>
    %133 = arith.addf %130, %132 : vector<1x32xf32>
    %134 = vector.extract_strided_slice %126 {offsets = [0, 64], sizes = [1, 32], strides = [1, 1]} : vector<1x96xf32> to vector<1x32xf32>
    %135 = math.tanh %133 : vector<1x32xf32>
    %136 = arith.mulf %134, %135 : vector<1x32xf32>
    %137 = vector.extract_strided_slice %136 {offsets = [0, 0], sizes = [1, 16], strides = [1, 1]} : vector<1x32xf32> to vector<1x16xf32>
    %c3_70 = arith.constant 3 : index
    %c0_71 = arith.constant 0 : index
    %138 = vector.load %arg13[%c3_70, %c0_71] : memref<8x32xf32, #tpu.memory_space<vmem>>, vector<1x16xf32>
    tpu.vector_store %arg13[%c3_70, %c0_71], %137 {strides = array<i32>} : memref<8x32xf32, #tpu.memory_space<vmem>>, vector<1x16xf32>,
    %139 = vector.extract_strided_slice %136 {offsets = [0, 16], sizes = [1, 16], strides = [1, 1]} : vector<1x32xf32> to vector<1x16xf32>
    %c4_72 = arith.constant 4 : index
    %c16_73 = arith.constant 16 : index
    %140 = vector.load %arg13[%c4_72, %c16_73] : memref<8x32xf32, #tpu.memory_space<vmem>>, vector<1x16xf32>
    tpu.vector_store %arg13[%c4_72, %c16_73], %139 {strides = array<i32>} : memref<8x32xf32, #tpu.memory_space<vmem>>, vector<1x16xf32>,
    %141 = vector.extract_strided_slice %45 {offsets = [4, 0], sizes = [1, 128], strides = [1, 1]} : vector<8x128xf32> to vector<1x128xf32>
    %cst_74 = arith.constant dense<0.000000e+00> : vector<1x128xf32>
    %142 = tpu.matmul %136, %46, %cst_74 {dimension_numbers = #tpu.dot_dimension_numbers<[1], [0], [0], [1], [0, 0, 1, 1], [], []>} : vector<1x32xf32>, vector<32x128xf32>, vector<1x128xf32> -> vector<1x128xf32>
    %143 = arith.addf %141, %142 : vector<1x128xf32>
    %144 = vector.extract_strided_slice %143 {offsets = [0, 0], sizes = [1, 96], strides = [1, 1]} : vector<1x128xf32> to vector<1x96xf32>
    %145 = arith.negf %144 : vector<1x96xf32>
    %146 = math.exp %145 : vector<1x96xf32>
    %cst_75 = arith.constant 1.000000e+00 : f32
    %147 = vector.broadcast %cst_75 : f32 to vector<1x96xf32>
    %148 = arith.addf %147, %146 : vector<1x96xf32>
    %149 = arith.divf %147, %148 : vector<1x96xf32>
    %150 = vector.extract_strided_slice %143 {offsets = [0, 96], sizes = [1, 32], strides = [1, 1]} : vector<1x128xf32> to vector<1x32xf32>
    %151 = math.tanh %150 : vector<1x32xf32>
    %152 = vector.extract_strided_slice %149 {offsets = [0, 32], sizes = [1, 32], strides = [1, 1]} : vector<1x96xf32> to vector<1x32xf32>
    %153 = arith.mulf %152, %133 : vector<1x32xf32>
    %154 = vector.extract_strided_slice %149 {offsets = [0, 0], sizes = [1, 32], strides = [1, 1]} : vector<1x96xf32> to vector<1x32xf32>
    %155 = arith.mulf %154, %151 : vector<1x32xf32>
    %156 = arith.addf %153, %155 : vector<1x32xf32>
    %157 = vector.extract_strided_slice %149 {offsets = [0, 64], sizes = [1, 32], strides = [1, 1]} : vector<1x96xf32> to vector<1x32xf32>
    %158 = math.tanh %156 : vector<1x32xf32>
    %159 = arith.mulf %157, %158 : vector<1x32xf32>
    %160 = vector.extract_strided_slice %159 {offsets = [0, 0], sizes = [1, 16], strides = [1, 1]} : vector<1x32xf32> to vector<1x16xf32>
    %c4_76 = arith.constant 4 : index
    %c0_77 = arith.constant 0 : index
    %161 = vector.load %arg13[%c4_76, %c0_77] : memref<8x32xf32, #tpu.memory_space<vmem>>, vector<1x16xf32>
    tpu.vector_store %arg13[%c4_76, %c0_77], %160 {strides = array<i32>} : memref<8x32xf32, #tpu.memory_space<vmem>>, vector<1x16xf32>,
    %162 = vector.extract_strided_slice %159 {offsets = [0, 16], sizes = [1, 16], strides = [1, 1]} : vector<1x32xf32> to vector<1x16xf32>
    %c3_78 = arith.constant 3 : index
    %c16_79 = arith.constant 16 : index
    %163 = vector.load %arg13[%c3_78, %c16_79] : memref<8x32xf32, #tpu.memory_space<vmem>>, vector<1x16xf32>
    tpu.vector_store %arg13[%c3_78, %c16_79], %162 {strides = array<i32>} : memref<8x32xf32, #tpu.memory_space<vmem>>, vector<1x16xf32>,
    %164 = vector.extract_strided_slice %45 {offsets = [5, 0], sizes = [1, 128], strides = [1, 1]} : vector<8x128xf32> to vector<1x128xf32>
    %cst_80 = arith.constant dense<0.000000e+00> : vector<1x128xf32>
    %165 = tpu.matmul %159, %46, %cst_80 {dimension_numbers = #tpu.dot_dimension_numbers<[1], [0], [0], [1], [0, 0, 1, 1], [], []>} : vector<1x32xf32>, vector<32x128xf32>, vector<1x128xf32> -> vector<1x128xf32>
    %166 = arith.addf %164, %165 : vector<1x128xf32>
    %167 = vector.extract_strided_slice %166 {offsets = [0, 0], sizes = [1, 96], strides = [1, 1]} : vector<1x128xf32> to vector<1x96xf32>
    %168 = arith.negf %167 : vector<1x96xf32>
    %169 = math.exp %168 : vector<1x96xf32>
    %cst_81 = arith.constant 1.000000e+00 : f32
    %170 = vector.broadcast %cst_81 : f32 to vector<1x96xf32>
    %171 = arith.addf %170, %169 : vector<1x96xf32>
    %172 = arith.divf %170, %171 : vector<1x96xf32>
    %173 = vector.extract_strided_slice %166 {offsets = [0, 96], sizes = [1, 32], strides = [1, 1]} : vector<1x128xf32> to vector<1x32xf32>
    %174 = math.tanh %173 : vector<1x32xf32>
    %175 = vector.extract_strided_slice %172 {offsets = [0, 32], sizes = [1, 32], strides = [1, 1]} : vector<1x96xf32> to vector<1x32xf32>
    %176 = arith.mulf %175, %156 : vector<1x32xf32>
    %177 = vector.extract_strided_slice %172 {offsets = [0, 0], sizes = [1, 32], strides = [1, 1]} : vector<1x96xf32> to vector<1x32xf32>
    %178 = arith.mulf %177, %174 : vector<1x32xf32>
    %179 = arith.addf %176, %178 : vector<1x32xf32>
    %180 = vector.extract_strided_slice %172 {offsets = [0, 64], sizes = [1, 32], strides = [1, 1]} : vector<1x96xf32> to vector<1x32xf32>
    %181 = math.tanh %179 : vector<1x32xf32>
    %182 = arith.mulf %180, %181 : vector<1x32xf32>
    %183 = vector.extract_strided_slice %182 {offsets = [0, 0], sizes = [1, 16], strides = [1, 1]} : vector<1x32xf32> to vector<1x16xf32>
    %c5_82 = arith.constant 5 : index
    %c0_83 = arith.constant 0 : index
    %184 = vector.load %arg13[%c5_82, %c0_83] : memref<8x32xf32, #tpu.memory_space<vmem>>, vector<1x16xf32>
    tpu.vector_store %arg13[%c5_82, %c0_83], %183 {strides = array<i32>} : memref<8x32xf32, #tpu.memory_space<vmem>>, vector<1x16xf32>,
    %185 = vector.extract_strided_slice %182 {offsets = [0, 16], sizes = [1, 16], strides = [1, 1]} : vector<1x32xf32> to vector<1x16xf32>
    %c2_84 = arith.constant 2 : index
    %c16_85 = arith.constant 16 : index
    %186 = vector.load %arg13[%c2_84, %c16_85] : memref<8x32xf32, #tpu.memory_space<vmem>>, vector<1x16xf32>
    tpu.vector_store %arg13[%c2_84, %c16_85], %185 {strides = array<i32>} : memref<8x32xf32, #tpu.memory_space<vmem>>, vector<1x16xf32>,
    %187 = vector.extract_strided_slice %45 {offsets = [6, 0], sizes = [1, 128], strides = [1, 1]} : vector<8x128xf32> to vector<1x128xf32>
    %cst_86 = arith.constant dense<0.000000e+00> : vector<1x128xf32>
    %188 = tpu.matmul %182, %46, %cst_86 {dimension_numbers = #tpu.dot_dimension_numbers<[1], [0], [0], [1], [0, 0, 1, 1], [], []>} : vector<1x32xf32>, vector<32x128xf32>, vector<1x128xf32> -> vector<1x128xf32>
    %189 = arith.addf %187, %188 : vector<1x128xf32>
    %190 = vector.extract_strided_slice %189 {offsets = [0, 0], sizes = [1, 96], strides = [1, 1]} : vector<1x128xf32> to vector<1x96xf32>
    %191 = arith.negf %190 : vector<1x96xf32>
    %192 = math.exp %191 : vector<1x96xf32>
    %cst_87 = arith.constant 1.000000e+00 : f32
    %193 = vector.broadcast %cst_87 : f32 to vector<1x96xf32>
    %194 = arith.addf %193, %192 : vector<1x96xf32>
    %195 = arith.divf %193, %194 : vector<1x96xf32>
    %196 = vector.extract_strided_slice %189 {offsets = [0, 96], sizes = [1, 32], strides = [1, 1]} : vector<1x128xf32> to vector<1x32xf32>
    %197 = math.tanh %196 : vector<1x32xf32>
    %198 = vector.extract_strided_slice %195 {offsets = [0, 32], sizes = [1, 32], strides = [1, 1]} : vector<1x96xf32> to vector<1x32xf32>
    %199 = arith.mulf %198, %179 : vector<1x32xf32>
    %200 = vector.extract_strided_slice %195 {offsets = [0, 0], sizes = [1, 32], strides = [1, 1]} : vector<1x96xf32> to vector<1x32xf32>
    %201 = arith.mulf %200, %197 : vector<1x32xf32>
    %202 = arith.addf %199, %201 : vector<1x32xf32>
    %203 = vector.extract_strided_slice %195 {offsets = [0, 64], sizes = [1, 32], strides = [1, 1]} : vector<1x96xf32> to vector<1x32xf32>
    %204 = math.tanh %202 : vector<1x32xf32>
    %205 = arith.mulf %203, %204 : vector<1x32xf32>
    %206 = vector.extract_strided_slice %205 {offsets = [0, 0], sizes = [1, 16], strides = [1, 1]} : vector<1x32xf32> to vector<1x16xf32>
    %c6_88 = arith.constant 6 : index
    %c0_89 = arith.constant 0 : index
    %207 = vector.load %arg13[%c6_88, %c0_89] : memref<8x32xf32, #tpu.memory_space<vmem>>, vector<1x16xf32>
    tpu.vector_store %arg13[%c6_88, %c0_89], %206 {strides = array<i32>} : memref<8x32xf32, #tpu.memory_space<vmem>>, vector<1x16xf32>,
    %208 = vector.extract_strided_slice %205 {offsets = [0, 16], sizes = [1, 16], strides = [1, 1]} : vector<1x32xf32> to vector<1x16xf32>
    %c1_90 = arith.constant 1 : index
    %c16_91 = arith.constant 16 : index
    %209 = vector.load %arg13[%c1_90, %c16_91] : memref<8x32xf32, #tpu.memory_space<vmem>>, vector<1x16xf32>
    tpu.vector_store %arg13[%c1_90, %c16_91], %208 {strides = array<i32>} : memref<8x32xf32, #tpu.memory_space<vmem>>, vector<1x16xf32>,
    %210 = vector.extract_strided_slice %45 {offsets = [7, 0], sizes = [1, 128], strides = [1, 1]} : vector<8x128xf32> to vector<1x128xf32>
    %cst_92 = arith.constant dense<0.000000e+00> : vector<1x128xf32>
    %211 = tpu.matmul %205, %46, %cst_92 {dimension_numbers = #tpu.dot_dimension_numbers<[1], [0], [0], [1], [0, 0, 1, 1], [], []>} : vector<1x32xf32>, vector<32x128xf32>, vector<1x128xf32> -> vector<1x128xf32>
    %212 = arith.addf %210, %211 : vector<1x128xf32>
    %213 = vector.extract_strided_slice %212 {offsets = [0, 0], sizes = [1, 96], strides = [1, 1]} : vector<1x128xf32> to vector<1x96xf32>
    %214 = arith.negf %213 : vector<1x96xf32>
    %215 = math.exp %214 : vector<1x96xf32>
    %cst_93 = arith.constant 1.000000e+00 : f32
    %216 = vector.broadcast %cst_93 : f32 to vector<1x96xf32>
    %217 = arith.addf %216, %215 : vector<1x96xf32>
    %218 = arith.divf %216, %217 : vector<1x96xf32>
    %219 = vector.extract_strided_slice %212 {offsets = [0, 96], sizes = [1, 32], strides = [1, 1]} : vector<1x128xf32> to vector<1x32xf32>
    %220 = math.tanh %219 : vector<1x32xf32>
    %221 = vector.extract_strided_slice %218 {offsets = [0, 32], sizes = [1, 32], strides = [1, 1]} : vector<1x96xf32> to vector<1x32xf32>
    %222 = arith.mulf %221, %202 : vector<1x32xf32>
    %223 = vector.extract_strided_slice %218 {offsets = [0, 0], sizes = [1, 32], strides = [1, 1]} : vector<1x96xf32> to vector<1x32xf32>
    %224 = arith.mulf %223, %220 : vector<1x32xf32>
    %225 = arith.addf %222, %224 : vector<1x32xf32>
    %226 = vector.extract_strided_slice %218 {offsets = [0, 64], sizes = [1, 32], strides = [1, 1]} : vector<1x96xf32> to vector<1x32xf32>
    %227 = math.tanh %225 : vector<1x32xf32>
    %228 = arith.mulf %226, %227 : vector<1x32xf32>
    %229 = vector.extract_strided_slice %228 {offsets = [0, 0], sizes = [1, 16], strides = [1, 1]} : vector<1x32xf32> to vector<1x16xf32>
    %c7_94 = arith.constant 7 : index
    %c0_95 = arith.constant 0 : index
    %230 = vector.load %arg13[%c7_94, %c0_95] : memref<8x32xf32, #tpu.memory_space<vmem>>, vector<1x16xf32>
    tpu.vector_store %arg13[%c7_94, %c0_95], %229 {strides = array<i32>} : memref<8x32xf32, #tpu.memory_space<vmem>>, vector<1x16xf32>,
    %231 = vector.extract_strided_slice %228 {offsets = [0, 16], sizes = [1, 16], strides = [1, 1]} : vector<1x32xf32> to vector<1x16xf32>
    %c0_96 = arith.constant 0 : index
    %c16_97 = arith.constant 16 : index
    %232 = vector.load %arg13[%c0_96, %c16_97] : memref<8x32xf32, #tpu.memory_space<vmem>>, vector<1x16xf32>
    tpu.vector_store %arg13[%c0_96, %c16_97], %231 {strides = array<i32>} : memref<8x32xf32, #tpu.memory_space<vmem>>, vector<1x16xf32>,
    %c0_98 = arith.constant 0 : index
    %c0_99 = arith.constant 0 : index
    %233 = vector.load %arg13[%c0_98, %c0_99] : memref<8x32xf32, #tpu.memory_space<vmem>>, vector<8x32xf32>
    %c0_100 = arith.constant 0 : index
    %c0_101 = arith.constant 0 : index
    %234 = vector.load %arg6[%c0_100, %c0_101] : memref<33x5xf32, #tpu.memory_space<vmem>>, vector<32x5xf32>
    %cst_102 = arith.constant dense<0.000000e+00> : vector<8x5xf32>
    %235 = tpu.matmul %233, %234, %cst_102 {dimension_numbers = #tpu.dot_dimension_numbers<[1], [0], [0], [1], [0, 0, 1, 1], [], []>} : vector<8x32xf32>, vector<32x5xf32>, vector<8x5xf32> -> vector<8x5xf32>
    %c32_103 = arith.constant 32 : index
    %c0_104 = arith.constant 0 : index
    %236 = vector.load %arg6[%c32_103, %c0_104] : memref<33x5xf32, #tpu.memory_space<vmem>>, vector<1x5xf32>
    %237 = vector.broadcast %236 : vector<1x5xf32> to vector<8x5xf32>
    %238 = arith.addf %235, %237 : vector<8x5xf32>
    %c0_105 = arith.constant 0 : index
    %c0_106 = arith.constant 0 : index
    %239 = vector.load %arg8[%c0_105, %c0_106] : memref<8x5xf32, #tpu.memory_space<vmem>>, vector<8x5xf32>
    tpu.vector_store %arg8[%c0_105, %c0_106], %238 {strides = array<i32>} : memref<8x5xf32, #tpu.memory_space<vmem>>, vector<8x5xf32>,
    %c0_107 = arith.constant 0 : index
    %c0_108 = arith.constant 0 : index
    %240 = vector.load %arg7[%c0_107, %c0_108] : memref<5x10xf32, #tpu.memory_space<vmem>>, vector<5x5xf32>
    %c0_109 = arith.constant 0 : index
    %c5_110 = arith.constant 5 : index
    %241 = vector.load %arg7[%c0_109, %c5_110] : memref<5x10xf32, #tpu.memory_space<vmem>>, vector<5x5xf32>
    %242 = tpu.iota {dimensions = array<i32: 0>} : vector<5x5xi32>
    %243 = tpu.iota {dimensions = array<i32: 1>} : vector<5x5xi32>
    %244 = tpu.iota {dimensions = array<i32: 0>} : vector<5x1xi32>
    %245 = tpu.iota {dimensions = array<i32: 1>} : vector<1x5xi32>
    %246 = arith.cmpi eq, %242, %243 : vector<5x5xi32>
    %247 = vector.extract_strided_slice %238 {offsets = [1, 0], sizes = [1, 5], strides = [1, 1]} : vector<8x5xf32> to vector<1x5xf32>
    %cst_111 = arith.constant 0.000000e+00 : f32
    %248 = vector.shape_cast %247 : vector<1x5xf32> to vector<1x5xf32>
    %249 = vector.broadcast %248 : vector<1x5xf32> to vector<5x5xf32>
    %250 = vector.broadcast %cst_111 : f32 to vector<5x5xf32>
    %251 = arith.select %246, %249, %250 : vector<5x5xi1>, vector<5x5xf32>
    %cst_112 = arith.constant dense<0.000000e+00> : vector<5xf32>
    %252 = vector.multi_reduction <add>, %251, %cst_112 [1] : vector<5x5xf32> to vector<5xf32>
    %253 = vector.shape_cast %252 : vector<5xf32> to vector<5x1xf32>
    %254 = vector.extract_strided_slice %238 {offsets = [3, 0], sizes = [1, 5], strides = [1, 1]} : vector<8x5xf32> to vector<1x5xf32>
    %cst_113 = arith.constant 0.000000e+00 : f32
    %255 = vector.shape_cast %254 : vector<1x5xf32> to vector<1x5xf32>
    %256 = vector.broadcast %255 : vector<1x5xf32> to vector<5x5xf32>
    %257 = vector.broadcast %cst_113 : f32 to vector<5x5xf32>
    %258 = arith.select %246, %256, %257 : vector<5x5xi1>, vector<5x5xf32>
    %cst_114 = arith.constant dense<0.000000e+00> : vector<5xf32>
    %259 = vector.multi_reduction <add>, %258, %cst_114 [1] : vector<5x5xf32> to vector<5xf32>
    %260 = vector.shape_cast %259 : vector<5xf32> to vector<5x1xf32>
    %261 = vector.extract_strided_slice %238 {offsets = [5, 0], sizes = [1, 5], strides = [1, 1]} : vector<8x5xf32> to vector<1x5xf32>
    %cst_115 = arith.constant 0.000000e+00 : f32
    %262 = vector.shape_cast %261 : vector<1x5xf32> to vector<1x5xf32>
    %263 = vector.broadcast %262 : vector<1x5xf32> to vector<5x5xf32>
    %264 = vector.broadcast %cst_115 : f32 to vector<5x5xf32>
    %265 = arith.select %246, %263, %264 : vector<5x5xi1>, vector<5x5xf32>
    %cst_116 = arith.constant dense<0.000000e+00> : vector<5xf32>
    %266 = vector.multi_reduction <add>, %265, %cst_116 [1] : vector<5x5xf32> to vector<5xf32>
    %267 = vector.shape_cast %266 : vector<5xf32> to vector<5x1xf32>
    %268 = vector.extract_strided_slice %238 {offsets = [7, 0], sizes = [1, 5], strides = [1, 1]} : vector<8x5xf32> to vector<1x5xf32>
    %cst_117 = arith.constant 0.000000e+00 : f32
    %269 = vector.shape_cast %268 : vector<1x5xf32> to vector<1x5xf32>
    %270 = vector.broadcast %269 : vector<1x5xf32> to vector<5x5xf32>
    %271 = vector.broadcast %cst_117 : f32 to vector<5x5xf32>
    %272 = arith.select %246, %270, %271 : vector<5x5xi1>, vector<5x5xf32>
    %cst_118 = arith.constant dense<0.000000e+00> : vector<5xf32>
    %273 = vector.multi_reduction <add>, %272, %cst_118 [1] : vector<5x5xf32> to vector<5xf32>
    %274 = vector.shape_cast %273 : vector<5xf32> to vector<5x1xf32>
    %c3_i32 = arith.constant 3 : i32
    %275 = vector.broadcast %c3_i32 : i32 to vector<5x1xi32>
    %276 = arith.cmpi eq, %244, %275 : vector<5x1xi32>
    %cst_119 = arith.constant 0.000000e+00 : f32
    %cst_120 = arith.constant -1.000000e+04 : f32
    %277 = vector.broadcast %cst_119 : f32 to vector<5x1xf32>
    %278 = vector.broadcast %cst_120 : f32 to vector<5x1xf32>
    %279 = arith.select %276, %277, %278 : vector<5x1xi1>, vector<5x1xf32>
    %280 = vector.broadcast %279 : vector<5x1xf32> to vector<5x5xf32>
    %281 = arith.addf %280, %241 : vector<5x5xf32>
    %cst_121 = arith.constant dense<0xFF800000> : vector<5xf32>
    %282 = vector.multi_reduction <maximumf>, %281, %cst_121 [0] : vector<5x5xf32> to vector<5xf32>
    %283 = vector.shape_cast %282 : vector<5xf32> to vector<1x5xf32>
    %284 = vector.broadcast %283 : vector<1x5xf32> to vector<5x5xf32>
    %285 = arith.cmpf oge, %281, %284 : vector<5x5xf32>
    %c5_i32 = arith.constant 5 : i32
    %286 = vector.broadcast %c5_i32 : i32 to vector<5x5xi32>
    %287 = arith.select %285, %242, %286 : vector<5x5xi1>, vector<5x5xi32>
    %cst_122 = arith.constant dense<2147483647> : vector<5xi32>
    %288 = vector.multi_reduction <minsi>, %287, %cst_122 [0] : vector<5x5xi32> to vector<5xi32>
    %289 = vector.shape_cast %288 : vector<5xi32> to vector<1x5xi32>
    %290 = vector.extract_strided_slice %238 {offsets = [0, 0], sizes = [1, 5], strides = [1, 1]} : vector<8x5xf32> to vector<1x5xf32>
    %291 = arith.addf %283, %290 : vector<1x5xf32>
    %292 = vector.broadcast %291 : vector<1x5xf32> to vector<5x5xf32>
    %293 = arith.addf %292, %240 : vector<5x5xf32>
    %cst_123 = arith.constant dense<0xFF800000> : vector<5xf32>
    %294 = vector.multi_reduction <maximumf>, %293, %cst_123 [1] : vector<5x5xf32> to vector<5xf32>
    %295 = vector.shape_cast %294 : vector<5xf32> to vector<5x1xf32>
    %296 = vector.broadcast %295 : vector<5x1xf32> to vector<5x5xf32>
    %297 = arith.cmpf oge, %293, %296 : vector<5x5xf32>
    %c5_i32_124 = arith.constant 5 : i32
    %298 = vector.broadcast %c5_i32_124 : i32 to vector<5x5xi32>
    %299 = arith.select %297, %243, %298 : vector<5x5xi1>, vector<5x5xi32>
    %cst_125 = arith.constant dense<2147483647> : vector<5xi32>
    %300 = vector.multi_reduction <minsi>, %299, %cst_125 [1] : vector<5x5xi32> to vector<5xi32>
    %301 = vector.shape_cast %300 : vector<5xi32> to vector<5x1xi32>
    %302 = arith.addf %295, %253 : vector<5x1xf32>
    %303 = vector.broadcast %302 : vector<5x1xf32> to vector<5x5xf32>
    %304 = arith.addf %303, %241 : vector<5x5xf32>
    %cst_126 = arith.constant dense<0xFF800000> : vector<5xf32>
    %305 = vector.multi_reduction <maximumf>, %304, %cst_126 [0] : vector<5x5xf32> to vector<5xf32>
    %306 = vector.shape_cast %305 : vector<5xf32> to vector<1x5xf32>
    %307 = vector.broadcast %306 : vector<1x5xf32> to vector<5x5xf32>
    %308 = arith.cmpf oge, %304, %307 : vector<5x5xf32>
    %c5_i32_127 = arith.constant 5 : i32
    %309 = vector.broadcast %c5_i32_127 : i32 to vector<5x5xi32>
    %310 = arith.select %308, %242, %309 : vector<5x5xi1>, vector<5x5xi32>
    %cst_128 = arith.constant dense<2147483647> : vector<5xi32>
    %311 = vector.multi_reduction <minsi>, %310, %cst_128 [0] : vector<5x5xi32> to vector<5xi32>
    %312 = vector.shape_cast %311 : vector<5xi32> to vector<1x5xi32>
    %313 = vector.extract_strided_slice %238 {offsets = [2, 0], sizes = [1, 5], strides = [1, 1]} : vector<8x5xf32> to vector<1x5xf32>
    %314 = arith.addf %306, %313 : vector<1x5xf32>
    %315 = vector.broadcast %314 : vector<1x5xf32> to vector<5x5xf32>
    %316 = arith.addf %315, %240 : vector<5x5xf32>
    %cst_129 = arith.constant dense<0xFF800000> : vector<5xf32>
    %317 = vector.multi_reduction <maximumf>, %316, %cst_129 [1] : vector<5x5xf32> to vector<5xf32>
    %318 = vector.shape_cast %317 : vector<5xf32> to vector<5x1xf32>
    %319 = vector.broadcast %318 : vector<5x1xf32> to vector<5x5xf32>
    %320 = arith.cmpf oge, %316, %319 : vector<5x5xf32>
    %c5_i32_130 = arith.constant 5 : i32
    %321 = vector.broadcast %c5_i32_130 : i32 to vector<5x5xi32>
    %322 = arith.select %320, %243, %321 : vector<5x5xi1>, vector<5x5xi32>
    %cst_131 = arith.constant dense<2147483647> : vector<5xi32>
    %323 = vector.multi_reduction <minsi>, %322, %cst_131 [1] : vector<5x5xi32> to vector<5xi32>
    %324 = vector.shape_cast %323 : vector<5xi32> to vector<5x1xi32>
    %325 = arith.addf %318, %260 : vector<5x1xf32>
    %326 = vector.broadcast %325 : vector<5x1xf32> to vector<5x5xf32>
    %327 = arith.addf %326, %241 : vector<5x5xf32>
    %cst_132 = arith.constant dense<0xFF800000> : vector<5xf32>
    %328 = vector.multi_reduction <maximumf>, %327, %cst_132 [0] : vector<5x5xf32> to vector<5xf32>
    %329 = vector.shape_cast %328 : vector<5xf32> to vector<1x5xf32>
    %330 = vector.broadcast %329 : vector<1x5xf32> to vector<5x5xf32>
    %331 = arith.cmpf oge, %327, %330 : vector<5x5xf32>
    %c5_i32_133 = arith.constant 5 : i32
    %332 = vector.broadcast %c5_i32_133 : i32 to vector<5x5xi32>
    %333 = arith.select %331, %242, %332 : vector<5x5xi1>, vector<5x5xi32>
    %cst_134 = arith.constant dense<2147483647> : vector<5xi32>
    %334 = vector.multi_reduction <minsi>, %333, %cst_134 [0] : vector<5x5xi32> to vector<5xi32>
    %335 = vector.shape_cast %334 : vector<5xi32> to vector<1x5xi32>
    %336 = vector.extract_strided_slice %238 {offsets = [4, 0], sizes = [1, 5], strides = [1, 1]} : vector<8x5xf32> to vector<1x5xf32>
    %337 = arith.addf %329, %336 : vector<1x5xf32>
    %338 = vector.broadcast %337 : vector<1x5xf32> to vector<5x5xf32>
    %339 = arith.addf %338, %240 : vector<5x5xf32>
    %cst_135 = arith.constant dense<0xFF800000> : vector<5xf32>
    %340 = vector.multi_reduction <maximumf>, %339, %cst_135 [1] : vector<5x5xf32> to vector<5xf32>
    %341 = vector.shape_cast %340 : vector<5xf32> to vector<5x1xf32>
    %342 = vector.broadcast %341 : vector<5x1xf32> to vector<5x5xf32>
    %343 = arith.cmpf oge, %339, %342 : vector<5x5xf32>
    %c5_i32_136 = arith.constant 5 : i32
    %344 = vector.broadcast %c5_i32_136 : i32 to vector<5x5xi32>
    %345 = arith.select %343, %243, %344 : vector<5x5xi1>, vector<5x5xi32>
    %cst_137 = arith.constant dense<2147483647> : vector<5xi32>
    %346 = vector.multi_reduction <minsi>, %345, %cst_137 [1] : vector<5x5xi32> to vector<5xi32>
    %347 = vector.shape_cast %346 : vector<5xi32> to vector<5x1xi32>
    %348 = arith.addf %341, %267 : vector<5x1xf32>
    %349 = vector.broadcast %348 : vector<5x1xf32> to vector<5x5xf32>
    %350 = arith.addf %349, %241 : vector<5x5xf32>
    %cst_138 = arith.constant dense<0xFF800000> : vector<5xf32>
    %351 = vector.multi_reduction <maximumf>, %350, %cst_138 [0] : vector<5x5xf32> to vector<5xf32>
    %352 = vector.shape_cast %351 : vector<5xf32> to vector<1x5xf32>
    %353 = vector.broadcast %352 : vector<1x5xf32> to vector<5x5xf32>
    %354 = arith.cmpf oge, %350, %353 : vector<5x5xf32>
    %c5_i32_139 = arith.constant 5 : i32
    %355 = vector.broadcast %c5_i32_139 : i32 to vector<5x5xi32>
    %356 = arith.select %354, %242, %355 : vector<5x5xi1>, vector<5x5xi32>
    %cst_140 = arith.constant dense<2147483647> : vector<5xi32>
    %357 = vector.multi_reduction <minsi>, %356, %cst_140 [0] : vector<5x5xi32> to vector<5xi32>
    %358 = vector.shape_cast %357 : vector<5xi32> to vector<1x5xi32>
    %359 = vector.extract_strided_slice %238 {offsets = [6, 0], sizes = [1, 5], strides = [1, 1]} : vector<8x5xf32> to vector<1x5xf32>
    %360 = arith.addf %352, %359 : vector<1x5xf32>
    %361 = vector.broadcast %360 : vector<1x5xf32> to vector<5x5xf32>
    %362 = arith.addf %361, %240 : vector<5x5xf32>
    %cst_141 = arith.constant dense<0xFF800000> : vector<5xf32>
    %363 = vector.multi_reduction <maximumf>, %362, %cst_141 [1] : vector<5x5xf32> to vector<5xf32>
    %364 = vector.shape_cast %363 : vector<5xf32> to vector<5x1xf32>
    %365 = vector.broadcast %364 : vector<5x1xf32> to vector<5x5xf32>
    %366 = arith.cmpf oge, %362, %365 : vector<5x5xf32>
    %c5_i32_142 = arith.constant 5 : i32
    %367 = vector.broadcast %c5_i32_142 : i32 to vector<5x5xi32>
    %368 = arith.select %366, %243, %367 : vector<5x5xi1>, vector<5x5xi32>
    %cst_143 = arith.constant dense<2147483647> : vector<5xi32>
    %369 = vector.multi_reduction <minsi>, %368, %cst_143 [1] : vector<5x5xi32> to vector<5xi32>
    %370 = vector.shape_cast %369 : vector<5xi32> to vector<5x1xi32>
    %371 = arith.addf %364, %274 : vector<5x1xf32>
    %372 = vector.extract_strided_slice %241 {offsets = [0, 4], sizes = [5, 1], strides = [1, 1]} : vector<5x5xf32> to vector<5x1xf32>
    %373 = arith.addf %371, %372 : vector<5x1xf32>
    %cst_144 = arith.constant dense<0xFF800000> : vector<1xf32>
    %374 = vector.multi_reduction <maximumf>, %373, %cst_144 [0] : vector<5x1xf32> to vector<1xf32>
    %375 = vector.shape_cast %374 : vector<1xf32> to vector<1x1xf32>
    %376 = vector.broadcast %375 : vector<1x1xf32> to vector<5x1xf32>
    %377 = arith.cmpf oge, %373, %376 : vector<5x1xf32>
    %c5_i32_145 = arith.constant 5 : i32
    %378 = vector.broadcast %c5_i32_145 : i32 to vector<5x1xi32>
    %379 = arith.select %377, %244, %378 : vector<5x1xi1>, vector<5x1xi32>
    %cst_146 = arith.constant dense<2147483647> : vector<1xi32>
    %380 = vector.multi_reduction <minsi>, %379, %cst_146 [0] : vector<5x1xi32> to vector<1xi32>
    %381 = vector.shape_cast %380 : vector<1xi32> to vector<1x1xi32>
    %c0_147 = arith.constant 0 : index
    %c0_148 = arith.constant 0 : index
    %382 = vector.load %arg10[%c0_147, %c0_148] : memref<1x1xf32, #tpu.memory_space<vmem>>, vector<1x1xf32>
    tpu.vector_store %arg10[%c0_147, %c0_148], %375 {strides = array<i32>} : memref<1x1xf32, #tpu.memory_space<vmem>>, vector<1x1xf32>,
    %383 = tpu.iota {dimensions = array<i32: 1>} : vector<1x8xi32>
    %c0_i32 = arith.constant 0 : i32
    %384 = vector.broadcast %c0_i32 : i32 to vector<1x8xi32>
    %c7_i32 = arith.constant 7 : i32
    %385 = vector.broadcast %c7_i32 : i32 to vector<1x8xi32>
    %386 = arith.cmpi eq, %383, %385 : vector<1x8xi32>
    %387 = vector.shape_cast %381 : vector<1x1xi32> to vector<1x1xi32>
    %388 = vector.broadcast %387 : vector<1x1xi32> to vector<1x8xi32>
    %389 = arith.select %386, %388, %384 : vector<1x8xi1>, vector<1x8xi32>
    %390 = vector.broadcast %381 : vector<1x1xi32> to vector<5x1xi32>
    %391 = arith.cmpi eq, %244, %390 : vector<5x1xi32>
    %c5_i32_149 = arith.constant 5 : i32
    %392 = vector.broadcast %c5_i32_149 : i32 to vector<5x1xi32>
    %393 = arith.select %391, %370, %392 : vector<5x1xi1>, vector<5x1xi32>
    %cst_150 = arith.constant dense<2147483647> : vector<1xi32>
    %394 = vector.multi_reduction <minsi>, %393, %cst_150 [0] : vector<5x1xi32> to vector<1xi32>
    %395 = vector.shape_cast %394 : vector<1xi32> to vector<1x1xi32>
    %c6_i32 = arith.constant 6 : i32
    %396 = vector.broadcast %c6_i32 : i32 to vector<1x8xi32>
    %397 = arith.cmpi eq, %383, %396 : vector<1x8xi32>
    %398 = vector.shape_cast %395 : vector<1x1xi32> to vector<1x1xi32>
    %399 = vector.broadcast %398 : vector<1x1xi32> to vector<1x8xi32>
    %400 = arith.select %397, %399, %389 : vector<1x8xi1>, vector<1x8xi32>
    %401 = vector.broadcast %395 : vector<1x1xi32> to vector<1x5xi32>
    %402 = arith.cmpi eq, %245, %401 : vector<1x5xi32>
    %c5_i32_151 = arith.constant 5 : i32
    %403 = vector.broadcast %c5_i32_151 : i32 to vector<1x5xi32>
    %404 = arith.select %402, %358, %403 : vector<1x5xi1>, vector<1x5xi32>
    %cst_152 = arith.constant dense<2147483647> : vector<1xi32>
    %405 = vector.multi_reduction <minsi>, %404, %cst_152 [1] : vector<1x5xi32> to vector<1xi32>
    %406 = vector.shape_cast %405 : vector<1xi32> to vector<1x1xi32>
    %c5_i32_153 = arith.constant 5 : i32
    %407 = vector.broadcast %c5_i32_153 : i32 to vector<1x8xi32>
    %408 = arith.cmpi eq, %383, %407 : vector<1x8xi32>
    %409 = vector.shape_cast %406 : vector<1x1xi32> to vector<1x1xi32>
    %410 = vector.broadcast %409 : vector<1x1xi32> to vector<1x8xi32>
    %411 = arith.select %408, %410, %400 : vector<1x8xi1>, vector<1x8xi32>
    %412 = vector.broadcast %406 : vector<1x1xi32> to vector<5x1xi32>
    %413 = arith.cmpi eq, %244, %412 : vector<5x1xi32>
    %c5_i32_154 = arith.constant 5 : i32
    %414 = vector.broadcast %c5_i32_154 : i32 to vector<5x1xi32>
    %415 = arith.select %413, %347, %414 : vector<5x1xi1>, vector<5x1xi32>
    %cst_155 = arith.constant dense<2147483647> : vector<1xi32>
    %416 = vector.multi_reduction <minsi>, %415, %cst_155 [0] : vector<5x1xi32> to vector<1xi32>
    %417 = vector.shape_cast %416 : vector<1xi32> to vector<1x1xi32>
    %c4_i32 = arith.constant 4 : i32
    %418 = vector.broadcast %c4_i32 : i32 to vector<1x8xi32>
    %419 = arith.cmpi eq, %383, %418 : vector<1x8xi32>
    %420 = vector.shape_cast %417 : vector<1x1xi32> to vector<1x1xi32>
    %421 = vector.broadcast %420 : vector<1x1xi32> to vector<1x8xi32>
    %422 = arith.select %419, %421, %411 : vector<1x8xi1>, vector<1x8xi32>
    %423 = vector.broadcast %417 : vector<1x1xi32> to vector<1x5xi32>
    %424 = arith.cmpi eq, %245, %423 : vector<1x5xi32>
    %c5_i32_156 = arith.constant 5 : i32
    %425 = vector.broadcast %c5_i32_156 : i32 to vector<1x5xi32>
    %426 = arith.select %424, %335, %425 : vector<1x5xi1>, vector<1x5xi32>
    %cst_157 = arith.constant dense<2147483647> : vector<1xi32>
    %427 = vector.multi_reduction <minsi>, %426, %cst_157 [1] : vector<1x5xi32> to vector<1xi32>
    %428 = vector.shape_cast %427 : vector<1xi32> to vector<1x1xi32>
    %c3_i32_158 = arith.constant 3 : i32
    %429 = vector.broadcast %c3_i32_158 : i32 to vector<1x8xi32>
    %430 = arith.cmpi eq, %383, %429 : vector<1x8xi32>
    %431 = vector.shape_cast %428 : vector<1x1xi32> to vector<1x1xi32>
    %432 = vector.broadcast %431 : vector<1x1xi32> to vector<1x8xi32>
    %433 = arith.select %430, %432, %422 : vector<1x8xi1>, vector<1x8xi32>
    %434 = vector.broadcast %428 : vector<1x1xi32> to vector<5x1xi32>
    %435 = arith.cmpi eq, %244, %434 : vector<5x1xi32>
    %c5_i32_159 = arith.constant 5 : i32
    %436 = vector.broadcast %c5_i32_159 : i32 to vector<5x1xi32>
    %437 = arith.select %435, %324, %436 : vector<5x1xi1>, vector<5x1xi32>
    %cst_160 = arith.constant dense<2147483647> : vector<1xi32>
    %438 = vector.multi_reduction <minsi>, %437, %cst_160 [0] : vector<5x1xi32> to vector<1xi32>
    %439 = vector.shape_cast %438 : vector<1xi32> to vector<1x1xi32>
    %c2_i32 = arith.constant 2 : i32
    %440 = vector.broadcast %c2_i32 : i32 to vector<1x8xi32>
    %441 = arith.cmpi eq, %383, %440 : vector<1x8xi32>
    %442 = vector.shape_cast %439 : vector<1x1xi32> to vector<1x1xi32>
    %443 = vector.broadcast %442 : vector<1x1xi32> to vector<1x8xi32>
    %444 = arith.select %441, %443, %433 : vector<1x8xi1>, vector<1x8xi32>
    %445 = vector.broadcast %439 : vector<1x1xi32> to vector<1x5xi32>
    %446 = arith.cmpi eq, %245, %445 : vector<1x5xi32>
    %c5_i32_161 = arith.constant 5 : i32
    %447 = vector.broadcast %c5_i32_161 : i32 to vector<1x5xi32>
    %448 = arith.select %446, %312, %447 : vector<1x5xi1>, vector<1x5xi32>
    %cst_162 = arith.constant dense<2147483647> : vector<1xi32>
    %449 = vector.multi_reduction <minsi>, %448, %cst_162 [1] : vector<1x5xi32> to vector<1xi32>
    %450 = vector.shape_cast %449 : vector<1xi32> to vector<1x1xi32>
    %c1_i32 = arith.constant 1 : i32
    %451 = vector.broadcast %c1_i32 : i32 to vector<1x8xi32>
    %452 = arith.cmpi eq, %383, %451 : vector<1x8xi32>
    %453 = vector.shape_cast %450 : vector<1x1xi32> to vector<1x1xi32>
    %454 = vector.broadcast %453 : vector<1x1xi32> to vector<1x8xi32>
    %455 = arith.select %452, %454, %444 : vector<1x8xi1>, vector<1x8xi32>
    %456 = vector.broadcast %450 : vector<1x1xi32> to vector<5x1xi32>
    %457 = arith.cmpi eq, %244, %456 : vector<5x1xi32>
    %c5_i32_163 = arith.constant 5 : i32
    %458 = vector.broadcast %c5_i32_163 : i32 to vector<5x1xi32>
    %459 = arith.select %457, %301, %458 : vector<5x1xi1>, vector<5x1xi32>
    %cst_164 = arith.constant dense<2147483647> : vector<1xi32>
    %460 = vector.multi_reduction <minsi>, %459, %cst_164 [0] : vector<5x1xi32> to vector<1xi32>
    %461 = vector.shape_cast %460 : vector<1xi32> to vector<1x1xi32>
    %c0_i32_165 = arith.constant 0 : i32
    %462 = vector.broadcast %c0_i32_165 : i32 to vector<1x8xi32>
    %463 = arith.cmpi eq, %383, %462 : vector<1x8xi32>
    %464 = vector.shape_cast %461 : vector<1x1xi32> to vector<1x1xi32>
    %465 = vector.broadcast %464 : vector<1x1xi32> to vector<1x8xi32>
    %466 = arith.select %463, %465, %455 : vector<1x8xi1>, vector<1x8xi32>
    %467 = vector.broadcast %461 : vector<1x1xi32> to vector<1x5xi32>
    %468 = arith.cmpi eq, %245, %467 : vector<1x5xi32>
    %c5_i32_166 = arith.constant 5 : i32
    %469 = vector.broadcast %c5_i32_166 : i32 to vector<1x5xi32>
    %470 = arith.select %468, %289, %469 : vector<1x5xi1>, vector<1x5xi32>
    %cst_167 = arith.constant dense<2147483647> : vector<1xi32>
    %471 = vector.multi_reduction <minsi>, %470, %cst_167 [1] : vector<1x5xi32> to vector<1xi32>
    %472 = vector.shape_cast %471 : vector<1xi32> to vector<1x1xi32>
    %c0_168 = arith.constant 0 : index
    %c0_169 = arith.constant 0 : index
    %473 = vector.load %arg9[%c0_168, %c0_169] : memref<1x8xi32, #tpu.memory_space<vmem>>, vector<1x8xi32>
    tpu.vector_store %arg9[%c0_168, %c0_169], %466 {strides = array<i32>} : memref<1x8xi32, #tpu.memory_space<vmem>>, vector<1x8xi32>,
    %c0_170 = arith.constant 0 : index
    %c0_171 = arith.constant 0 : index
    %474 = vector.load %arg11[%c0_170, %c0_171] : memref<1x1xi32, #tpu.memory_space<vmem>>, vector<1x1xi32>
    tpu.vector_store %arg11[%c0_170, %c0_171], %472 {strides = array<i32>} : memref<1x1xi32, #tpu.memory_space<vmem>>, vector<1x1xi32>,
    return
  }
  func.func @transform_0(%arg0: i32, %arg1: memref<8xi32, #tpu.memory_space<smem>>) -> (i32, i32) {
    %c0_i32 = arith.constant 0 : i32
    %c0_i32_0 = arith.constant 0 : i32
    %c0_i32_1 = arith.constant 0 : i32
    return %c0_i32, %c0_i32_0 : i32, i32
  }
  func.func @transform_1(%arg0: i32, %arg1: memref<8xi32, #tpu.memory_space<smem>>) -> (i32, i32) {
    %c0_i32 = arith.constant 0 : i32
    %c0_i32_0 = arith.constant 0 : i32
    %c0_i32_1 = arith.constant 0 : i32
    return %c0_i32, %c0_i32_0 : i32, i32
  }
  func.func @transform_2(%arg0: i32, %arg1: memref<8xi32, #tpu.memory_space<smem>>) -> (i32, i32) {
    %c0_i32 = arith.constant 0 : i32
    %c0_i32_0 = arith.constant 0 : i32
    %c0_i32_1 = arith.constant 0 : i32
    return %c0_i32, %c0_i32_0 : i32, i32
  }
  func.func @transform_3(%arg0: i32, %arg1: memref<8xi32, #tpu.memory_space<smem>>) -> (i32, i32) {
    %c0_i32 = arith.constant 0 : i32
    %c0_i32_0 = arith.constant 0 : i32
    %c0_i32_1 = arith.constant 0 : i32
    return %c0_i32, %c0_i32_0 : i32, i32
  }
  func.func @transform_4(%arg0: i32, %arg1: memref<8xi32, #tpu.memory_space<smem>>) -> (i32, i32) {
    %c0_i32 = arith.constant 0 : i32
    %c0_i32_0 = arith.constant 0 : i32
    %c0_i32_1 = arith.constant 0 : i32
    return %c0_i32, %c0_i32_0 : i32, i32
  }
  func.func @transform_5(%arg0: i32, %arg1: memref<8xi32, #tpu.memory_space<smem>>) -> (i32, i32) {
    %c0_i32 = arith.constant 0 : i32
    %c0_i32_0 = arith.constant 0 : i32
    %c0_i32_1 = arith.constant 0 : i32
    return %c0_i32, %c0_i32_0 : i32, i32
  }
  func.func @transform_6(%arg0: i32, %arg1: memref<8xi32, #tpu.memory_space<smem>>) -> (i32, i32) {
    %c0_i32 = arith.constant 0 : i32
    %c0_i32_0 = arith.constant 0 : i32
    %c0_i32_1 = arith.constant 0 : i32
    return %c0_i32, %c0_i32_0 : i32, i32
  }
  func.func @transform_7(%arg0: i32, %arg1: memref<8xi32, #tpu.memory_space<smem>>) -> (i32, i32) {
    %c0_i32 = arith.constant 0 : i32
    %c0_i32_0 = arith.constant 0 : i32
    %c0_i32_1 = arith.constant 0 : i32
    return %c0_i32, %c0_i32_0 : i32, i32
  }
  func.func @transform_8(%arg0: i32, %arg1: memref<8xi32, #tpu.memory_space<smem>>) -> (i32, i32) {
    %c0_i32 = arith.constant 0 : i32
    %c0_i32_0 = arith.constant 0 : i32
    %c0_i32_1 = arith.constant 0 : i32
    return %c0_i32, %c0_i32_0 : i32, i32
  }
  func.func @transform_9(%arg0: i32, %arg1: memref<8xi32, #tpu.memory_space<smem>>) -> (i32, i32) {
    %c0_i32 = arith.constant 0 : i32
    %c0_i32_0 = arith.constant 0 : i32
    %c0_i32_1 = arith.constant 0 : i32
    return %c0_i32, %c0_i32_0 : i32, i32
  }
}

</mosaic_0001>

<bundles_post_ra>
// kernel: bilstm_crf_forward.1
= control target key start
LH: loop header
LB: loop body
LE: loop exit
PB: predicated region body
PF: predicated region fallthrough
CT: control target
= control target key end

     0   :  { %s2666_s0 = inlined_call_operand.vmem [shape: s32[8], index: 0, kind: input, shape index: {}]   ;;  %s2667_s1 = inlined_call_operand.vmem [shape: f32[20,16], index: 1, kind: input, shape index: {}]   ;;  %s2668_s2 = inlined_call_operand.vmem [shape: f32[33,128], index: 2, kind: input, shape index: {}]   ;;  %s2669_s3 = inlined_call_operand.vmem [shape: f32[32,128], index: 3, kind: input, shape index: {}]   ;;  %s2670_s4 = inlined_call_operand.hbm [shape: f32[2,32], index: 4, kind: input, shape index: {}]   ;;  %s2671_s5 = inlined_call_operand.vmem [shape: f32[33,5], index: 5, kind: input, shape index: {}]   ;;  %s2672_s6 = inlined_call_operand.vmem [shape: f32[5,10], index: 6, kind: input, shape index: {}]   ;;  %s2673_s7 = inlined_call_operand.hbm [shape: f32[8,5], index: 7, kind: output, shape index: {0}]   ;;  %s2674_s8 = inlined_call_operand.hbm [shape: s32[1,8], index: 8, kind: output, shape index: {1}]   ;;  %s2675_s9 = inlined_call_operand.hbm [shape: f32[1,1], index: 9, kind: output, shape index: {2}]   ;;  %s2676_s10 = inlined_call_operand.hbm [shape: s32[1,1], index: 10, kind: output, shape index: {3}]  }
   0x1   :  { %s16_s15 = sshll.u32 %s2666_s0, 4  ;;  %s17_s15 = int_to_ptr.vmem [resolvable:$true] %s16_s15 }
   0x2   :  { %s1976_s16 = scalar_lea.vmem %s17_s15, 16  ;;  %p1981_p1 = scmp.lt.s32.totalorder %s17_s15, %s17_s15 }
   0x3   :  { %p1977_p0 = scmp.ne.s32.totalorder %s17_s15, %s1976_s16  ;;  %p1982_p2 = scmp.lt.s32.totalorder %s1976_s16, %s1976_s16 }
   0x5   :  { %p1983_p3 = por %p1982_p2, %p1981_p1 }
   0x7   :  { %p1984_p4 = pnand %p1983_p3, %p1977_p0 }
   0x9   :  { %1987 = shalt.err (!%p1984_p4)  }
   0xa   :  { %s2098_s17 = smov [#allocation5]  }
   0xb   :  { %19 = dma.vmem_to_smem %s17_s15, 16, %s2098_s17, [#allocation4] }
   0xc   :  { %2088 = dma.done.wait [#allocation4], 16 }
   0xd   :  { %2089 = vsyncadd [#allocation4], 4294967280 }
   0xe   :  { %21 = sfence }
   0xf   :  { %22 = vsyncpa [#allocation7], 0 }
  0x10   :  { %23 = vsyncpa [#allocation8], 0 }
  0x11   :  { %24 = vsyncpa [#allocation11], 0 }
  0x12   :  { %25 = vsyncpa [#allocation14], 0  ;;  %s2099_s18 = smov [#allocation6]  }
  0x13   :  { %s38_s19 = sshll.u32 %s2099_s18, 4  ;;  %s39_s19 = int_to_ptr.vmem [resolvable:$true] %s38_s19 }
  0x14   :  { %s1996_s0 = scalar_lea.vmem %s39_s19, 32  ;;  %p2001_p6 = scmp.lt.s32.totalorder %s39_s19, %s39_s19 }
  0x15   :  { %p1997_p5 = scmp.ne.s32.totalorder %s39_s19, %s1996_s0  ;;  %p2002_p7 = scmp.lt.s32.totalorder %s1996_s0, %s1996_s0 }
  0x17   :  { %p2003_p8 = por %p2002_p7, %p2001_p6 }
  0x19   :  { %p2004_p9 = pnand %p2003_p8, %p1997_p5 }
  0x1b   :  { %2007 = shalt.err (!%p2004_p9)
}
  0x1c   :  { %41 = dma.hbm_to_vmem [thread:$0]  %s2670_s4, 32, %s39_s19, [#allocation7]  }
  0x1d   :  { %2090 = dma.done.wait [#allocation7], 32  }
  0x1e   :  { %2091 = vsyncadd [#allocation7], 4294967264  ;;  %s1708_s22 = sld [smem:[#allocation5 + $0x2]]  ;;  %vm52_vm0 = vcmask 122880   ;;  %s2100_s15 = smov 16   ;;  %v2101_v2 = vmov 0.0  }
  0x1f   :  { %s49_s23 = sld [smem:[#allocation5]]  ;;  %1784 = vmatprep.subr.mxu0 %v2101_v2  ;;  %v127_v3 = vld [vmem:[%s2668_s2 + $0x18] sm:$0xff]  ;;  %1795 = vmatprep.subr.mxu1 %v2101_v2  ;;  %v126_v6 = vld [vmem:[%s2668_s2 + $0x10] sm:$0xff]  ;;  %v125_v9 = vld [vmem:[%s2668_s2 + $0x8] sm:$0xff]  ;;  %vm133_vm1 = vcmask 261120   ;;  %vm2102_vm2 = vmmov 0  }
  0x20   :  { %s1709_s24 = sld [smem:[#allocation5 + $0x3]]  ;;  %v2201_v4 = vld [vmem:[%s2669_s3 + $0x18] sm:$0xff]  ;;  %1785 = vmatpush3.msra.mxu0 %v127_v3  ;;  %v2221_v8 = vld [vmem:[%s2669_s3 + $0x10] sm:$0xff]  ;;  %v2237_v10 = vld [vmem:[%s2669_s3 + $0x8] sm:$0xff]  ;;  %1792 = vmatprep.mubr.msk.f32.mxu0 %vm2102_vm2, %v2101_v2  ;;  %vm58_vm3 = vcmask 254080   ;;  %vm428_vm4 = vcmask 123905  }
  0x21   :  { %s1707_s25 = sld [smem:[#allocation5 + $0x1]]  ;;  %1796 = vmatpush3.msra.mxu1 %v2201_v4  ;;  %1786 = vmatprep.subr.mxu0 %v2101_v2  ;;  %v124_v13 = vld [vmem:[%s2668_s2] sm:$0xff]  ;;  %v211_v16 = vld [vmem:[#allocation6] sm:$0x1]  ;;  %v212_v18 = vld [vmem:[#allocation6 + $0x1] sm:$0x1] }
  0x22   :  { %s2175_s26 = sld [smem:[#allocation5 + $0x5]]  ;;  %1797 = vmatprep.subr.mxu1 %v2101_v2  ;;  %1787 = vmatpush3.msra.mxu0 %v126_v6  ;;  %v2260_v14 = vld [vmem:[%s2669_s3] sm:$0xff]  ;;  %vm430_vm5 = vcmask 255105   ;;  %vm656_vm6 = vcmask 125955   ;;  %vm658_vm7 = vcmask 257155   ;;  %vm542_vm8 = vcmask 124930  }
  0x23   :  { %s2177_s27 = sld [smem:[#allocation5 + $0x4]]  ;;  %1798 = vmatpush3.msra.mxu1 %v2221_v8  ;;  %1788 = vmatprep.subr.mxu0 %v2101_v2  ;;  %v1714_v30 = vld [vmem:[%s2668_s2 + $0x20] ss:$0 sm:$0xff]  ;;  %s2104_s2 = smov 64   ;;  %vm544_vm9 = vcmask 256130   ;;  %vm884_vm10 = vcmask 128005  }
  0x24   :  { %s70_s30 = scalar_lea.vmem %s2667_s1, %s1708_s22  ;;  %s2182_s11 = sld [smem:[#allocation5 + $0x7]]  ;;  %1799 = vmatprep.subr.mxu1 %v2101_v2  ;;  %1789 = vmatpush3.msra.mxu0 %v125_v9  ;;  %vm886_vm11 = vcmask 259205   ;;  %vm770_vm12 = vcmask 126980   ;;  %vm772_vm13 = vcmask 258180   ;;  %vm998_vm14 = vcmask 129030  }
  0x25   :  { %v71_v0 = vld [vmem:[%s70_s30] sm:$0x1]  ;;  %s50_s13 = scalar_lea.vmem %s2667_s1, %s49_s23  ;;  %s2187_s14 = sld [smem:[#allocation5 + $0x6]]  ;;  %1800 = vmatpush3.msra.mxu1 %v2237_v10  ;;  %1790 = vmatprep.subr.mxu0 %v2101_v2  ;;  %vm1000_vm15 = vcmask 260230  }
  0x26   :  { %74 = vrot.lane.b32.xlu1 %v71_v0, %s2100_s15  ;;  %72 = vst.msk [vmem:[#allocation2 + $0x2] sm:$0x1] %vm52_vm0, %v71_v0  ;;  %v51_v1 = vld [vmem:[%s50_s13] sm:$0x1]  ;;  %s79_s18 = scalar_lea.vmem %s2667_s1, %s1709_s24  ;;  %1801 = vmatprep.subr.mxu1 %v2101_v2  ;;  %s2105_s20 = smov 5  }
  0x27   :  { %55 = vrot.lane.b32.xlu0 %v51_v1, %s2100_s15  ;;  %53 = vst.msk [vmem:[#allocation2] sm:$0x1] %vm52_vm0, %v51_v1  ;;  %v80_v5 = vld [vmem:[%s79_s18] sm:$0x1]  ;;  %s61_s24 = scalar_lea.vmem %s2667_s1, %s1707_s25  ;;  %1791 = vmatpush3.msra.mxu0 %v124_v13  ;;  %s2110_s23 = smov [#allocation9]  }
  0x28   :  { %81 = vst.msk [vmem:[#allocation2 + $0x3] sm:$0x1] %vm52_vm0, %v80_v5  ;;  %v62_v7 = vld [vmem:[%s61_s24] sm:$0x1]  ;;  %s97_s4 = scalar_lea.vmem %s2667_s1, %s2175_s26  ;;  %1802 = vmatpush3.msra.mxu1 %v2260_v14  ;;  %1803 = vmatprep.mubr.msk.f32.mxu1 %vm2102_vm2, %v2101_v2  ;;  %s1649_s24 = sshll.u32 %s2110_s23, 4  ;;  %s1650_s24 = int_to_ptr.vmem [resolvable:$true] %s1649_s24 }
  0x29   :  { %63 = vst.msk [vmem:[#allocation2 + $0x1] sm:$0x1] %vm52_vm0, %v62_v7  ;;  %s88_s18 = scalar_lea.vmem %s2667_s1, %s2177_s27  ;;  %v98_v11 = vld [vmem:[%s97_s4] sm:$0x1]  ;;  %1804 = vmatmul.mubr.msk.f32.vlgmr.msra.gmra.mxu1 %vm133_vm1, %v211_v16  ;;  %1806 = vmatprep.subr.mxu0 %v2101_v2 }
  0x2a   :  { %83 = vrot.lane.b32.xlu1 %v80_v5, %s2100_s15  ;;  %v89_v12 = vld [vmem:[%s88_s18] sm:$0x1]  ;;  %s115_s22 = scalar_lea.vmem %s2667_s1, %s2182_s11  ;;  %1817 = vmatprep.subr.mxu1 %v2101_v2 }
  0x2b   :  { %65 = vrot.lane.b32.xlu0 %v62_v7, %s2100_s15  ;;  %s106_s28 = scalar_lea.vmem %s2667_s1, %s2187_s14  ;;  %v116_v15 = vld [vmem:[%s115_s22] sm:$0x1]  ;;  %1825 = vmatprep.mubr.msk.f32.mxu1 %vm2102_vm2, %v2101_v2  ;;  %s2103_s1 = smov 32  }
  0x2c   :  { %v107_v17 = vld [vmem:[%s106_s28] sm:$0x1]  ;;  %1818 = vmatpush3.msra.mxu1 %v2201_v4  ;;  %s2111_s28 = smov 119  }
  0x2d   :  { %1819 = vmatprep.subr.mxu1 %v2101_v2 }
  0x2e   :  { %101 = vrot.lane.b32.xlu1 %v98_v11, %s2100_s15  ;;  %1820 = vmatpush3.msra.mxu1 %v2221_v8 }
  0x2f   :  { %92 = vrot.lane.b32.xlu0 %v89_v12, %s2100_s15  ;;  %1821 = vmatprep.subr.mxu1 %v2101_v2 }
  0x30   :  { %1822 = vmatpush3.msra.mxu1 %v2237_v10 }
  0x31   :  { %1823 = vmatprep.subr.mxu1 %v2101_v2 }
  0x32   :  { %119 = vrot.lane.b32.xlu1 %v116_v15, %s2100_s15  ;;  %1824 = vmatpush3.msra.mxu1 %v2260_v14 }
  0x33   :  { %110 = vrot.lane.b32.xlu0 %v107_v17, %s2100_s15  ;;  %1839 = vmatprep.subr.mxu1 %v2101_v2 }
  0x36   :  { %295 = vrot.lane.b32.xlu1 %v212_v18, %s2103_s1 }
  0x98   :  { %v75_v19 = vpop.permute.xlu1 %74 }
  0x99   :  { %77 = vst.msk [vmem:[#allocation2 + $0x5] sm:$0x1] %vm58_vm3, %v75_v19  ;;  %v56_v20 = vpop.permute.xlu0 %55 }
  0x9a   :  { %99 = vst.msk [vmem:[#allocation2 + $0x5] sm:$0x1] %vm52_vm0, %v98_v11 }
  0x9b   :  { %59 = vst.msk [vmem:[#allocation2 + $0x7] sm:$0x1] %vm58_vm3, %v56_v20 }
  0x9c   :  { %117 = vst.msk [vmem:[#allocation2 + $0x7] sm:$0x1] %vm52_vm0, %v116_v15  ;;  %v84_v21 = vpop.permute.xlu1 %83 }
  0x9d   :  { %86 = vst.msk [vmem:[#allocation2 + $0x4] sm:$0x1] %vm58_vm3, %v84_v21  ;;  %v66_v22 = vpop.permute.xlu0 %65 }
  0x9e   :  { %90 = vst.msk [vmem:[#allocation2 + $0x4] sm:$0x1] %vm52_vm0, %v89_v12 }
  0x9f   :  { %68 = vst.msk [vmem:[#allocation2 + $0x6] sm:$0x1] %vm58_vm3, %v66_v22 }
  0xa0   :  { %108 = vst.msk [vmem:[#allocation2 + $0x6] sm:$0x1] %vm52_vm0, %v107_v17  ;;  %v102_v23 = vpop.permute.xlu1 %101 }
  0xa1   :  { %104 = vst.msk [vmem:[#allocation2 + $0x2] sm:$0x1] %vm58_vm3, %v102_v23  ;;  %v93_v24 = vpop.permute.xlu0 %92 }
  0xa2   :  { %95 = vst.msk [vmem:[#allocation2 + $0x3] sm:$0x1] %vm58_vm3, %v93_v24 }
  0xa4   :  { %v120_v25 = vpop.permute.xlu1 %119 }
  0xa5   :  { %122 = vst.msk [vmem:[#allocation2] sm:$0x1] %vm58_vm3, %v120_v25  ;;  %v111_v26 = vpop.permute.xlu0 %110 }
  0xa6   :  { %113 = vst.msk [vmem:[#allocation2 + $0x1] sm:$0x1] %vm58_vm3, %v111_v26 }
  0xa8   :  { %v296_v42 = vpop.permute.xlu1 %295 }
  0xad   :  { %v123_v27 = vld [vmem:[#allocation2] sm:$0xff] }
  0xae   :  { %1793 = vmatmul.mubr.msk.f32.vlgmr.msra.gmra.mxu0 %vm133_vm1, %v123_v27 }
  0xaf   :  { %1807 = vmatpush3.msra.mxu0 %v2201_v4  ;;  %1814 = vmatprep.mubr.msk.f32.mxu0 %vm2102_vm2, %v2101_v2 }
  0xb0   :  { %1808 = vmatprep.subr.mxu0 %v2101_v2 }
  0xb1   :  { %1809 = vmatpush3.msra.mxu0 %v2221_v8 }
  0xb2   :  { %1810 = vmatprep.subr.mxu0 %v2101_v2 }
  0xb3   :  { %1811 = vmatpush3.msra.mxu0 %v2237_v10 }
  0xb4   :  { %1812 = vmatprep.subr.mxu0 %v2101_v2 }
  0xb5   :  { %1813 = vmatpush3.msra.mxu0 %v2260_v14 }
  0xb6   :  { %1828 = vmatprep.subr.mxu0 %v2101_v2 }
  0xe9   :  { %v282_v28 = vpop.f32.mrf.mxu1 }
  0xeb   :  { %v1805_v29 = vpop.f32.mrf.mxu1 }
 0x16e   :  { %v203_v31 = vpop.f32.mrf.mxu0 }
 0x16f   :  { %v2311_v32 = vadd.f32 %v1714_v30, %v203_v31 }
 0x170   :  { %v1794_v33 = vpop.f32.mrf.mxu0 }
 0x171   :  { %v286_v34 = vadd.f32 %v282_v28, %v2311_v32 }
 0x173   :  { %1912 = vtanh.f32 %v286_v34  ;;  %v1717_v36 = vmul.f32 -1.442695, %v286_v34 }
 0x175   :  { %1914 = vpow2.f32 %v1717_v36 }
 0x180   :  { %v1913_v35 = vpop.eup %1912 }
 0x181   :  { %300 = vrot.lane.b32.xlu0 %v1913_v35, %s2103_s1 }
 0x182   :  { %v1915_v37 = vpop.eup %1914 }
 0x183   :  { %v290_v38 = vadd.f32 1.0, %v1915_v37 }
 0x185   :  { %1916 = vrcp.f32 %v290_v38 }
 0x192   :  { %v1917_v39 = vpop.eup %1916 }
 0x193   :  { %v298_v43 = vmul.f32 %v1917_v39, %v296_v42 }
 0x1f3   :  { %v301_v40 = vpop.permute.xlu0 %300 }
 0x1f4   :  { %v303_v41 = vmul.f32 %v1917_v39, %v301_v40 }
 0x1f6   :  { %305 = vrot.lane.b32.xlu0 %v303_v41, %s2103_s1 }
 0x268   :  { %v306_v44 = vpop.permute.xlu0 %305 }
 0x269   :  { %v308_v45 = vadd.f32 %v306_v44, %v298_v43 }
 0x26b   :  { %1918 = vtanh.f32 %v308_v45  ;;  %v405_v61 = vrot.slane %v308_v45, 7 }
 0x278   :  { %v1919_v46 = vpop.eup %1918 }
 0x279   :  { %311 = vrot.lane.b32.xlu1 %v1919_v46, %s2103_s1 }
 0x2eb   :  { %v312_v47 = vpop.permute.xlu1 %311 }
 0x2ec   :  { %v314_v48 = vmul.f32 %v1917_v39, %v312_v47 }
 0x2ee   :  { %316 = vrot.lane.b32.xlu0 %v314_v48, %s2104_s2 }
 0x360   :  { %v317_v49 = vpop.permute.xlu0 %316 }
 0x361   :  { %319 = vst.msk [vmem:[#allocation3] sm:$0x1] %vm52_vm0, %v317_v49  ;;  %1815 = vmatmul.mubr.msk.f32.vlgmr.msra.gmra.mxu0 %vm133_vm1, %v317_v49  ;;  %vm1112_vm0 = vcmask 130055  }
 0x362   :  { %320 = vst.msk [vmem:[#allocation3 + $0x7] sm:$0x1] %vm58_vm3, %v317_v49  ;;  %1829 = vmatpush3.msra.mxu0 %v2201_v4  ;;  %1836 = vmatprep.mubr.msk.f32.mxu0 %vm2102_vm2, %v2101_v2 }
 0x363   :  { %1830 = vmatprep.subr.mxu0 %v2101_v2 }
 0x364   :  { %1831 = vmatpush3.msra.mxu0 %v2221_v8 }
 0x365   :  { %1832 = vmatprep.subr.mxu0 %v2101_v2 }
 0x366   :  { %1833 = vmatpush3.msra.mxu0 %v2237_v10 }
 0x367   :  { %1834 = vmatprep.subr.mxu0 %v2101_v2 }
 0x368   :  { %1835 = vmatpush3.msra.mxu0 %v2260_v14 }
 0x369   :  { %1850 = vmatprep.subr.mxu0 %v2101_v2 }
 0x421   :  { %v389_v50 = vpop.f32.mrf.mxu0 }
 0x422   :  { %v394_v51 = vrot.slane %v389_v50, 7 }
 0x423   :  { %v1816_v52 = vpop.f32.mrf.mxu0 }
 0x424   :  { %v396_v53 = vadd.f32 %v394_v51, %v2311_v32 }
 0x426   :  { %1920 = vtanh.f32 %v396_v53  ;;  %v1719_v55 = vmul.f32 -1.442695, %v396_v53 }
 0x428   :  { %1922 = vpow2.f32 %v1719_v55 }
 0x433   :  { %v1921_v54 = vpop.eup %1920 }
 0x434   :  { %409 = vrot.lane.b32.xlu1 %v1921_v54, %s2103_s1 }
 0x435   :  { %v1923_v56 = vpop.eup %1922 }
 0x436   :  { %v400_v57 = vadd.f32 1.0, %v1923_v56 }
 0x438   :  { %1924 = vrcp.f32 %v400_v57 }
 0x445   :  { %v1925_v58 = vpop.eup %1924 }
 0x446   :  { %v407_v62 = vmul.f32 %v1925_v58, %v405_v61 }
 0x4a6   :  { %v410_v59 = vpop.permute.xlu1 %409 }
 0x4a7   :  { %v412_v60 = vmul.f32 %v1925_v58, %v410_v59 }
 0x4a9   :  { %414 = vrot.lane.b32.xlu0 %v412_v60, %s2103_s1 }
 0x51b   :  { %v415_v63 = vpop.permute.xlu0 %414 }
 0x51c   :  { %v417_v0 = vadd.f32 %v415_v63, %v407_v62 }
 0x51e   :  { %1926 = vtanh.f32 %v417_v0  ;;  %v519_v22 = vrot.slane %v417_v0, 7 }
 0x52b   :  { %v1927_v1 = vpop.eup %1926 }
 0x52c   :  { %420 = vrot.lane.b32.xlu1 %v1927_v1, %s2103_s1 }
 0x59e   :  { %v421_v3 = vpop.permute.xlu1 %420 }
 0x59f   :  { %v2335_v5 = vmul.f32 %v1925_v58, %v421_v3 }
 0x5a1   :  { %v432_v6 = vrot.slane %v2335_v5, 1 }
 0x5a3   :  { %433 = vrot.lane.b32.xlu0 %v432_v6, %s2104_s2 }
 0x615   :  { %v434_v7 = vpop.permute.xlu0 %433 }
 0x616   :  { %1826 = vmatmul.mubr.msk.f32.vlgmr.msra.gmra.mxu1 %vm133_vm1, %v434_v7 }
 0x617   :  { %1840 = vmatpush3.msra.mxu1 %v2201_v4  ;;  %1847 = vmatprep.mubr.msk.f32.mxu1 %vm2102_vm2, %v2101_v2 }
 0x618   :  { %1841 = vmatprep.subr.mxu1 %v2101_v2 }
 0x619   :  { %1842 = vmatpush3.msra.mxu1 %v2221_v8 }
 0x61a   :  { %1843 = vmatprep.subr.mxu1 %v2101_v2 }
 0x61b   :  { %1844 = vmatpush3.msra.mxu1 %v2237_v10 }
 0x61c   :  { %1845 = vmatprep.subr.mxu1 %v2101_v2 }
 0x61d   :  { %1846 = vmatpush3.msra.mxu1 %v2260_v14 }
 0x61e   :  { %1861 = vmatprep.subr.mxu1 %v2101_v2 }
 0x6d6   :  { %v503_v9 = vpop.f32.mrf.mxu1 }
 0x6d7   :  { %v508_v11 = vrot.slane %v503_v9, 6 }
 0x6d8   :  { %v1827_v12 = vpop.f32.mrf.mxu1 }
 0x6d9   :  { %v510_v13 = vadd.f32 %v508_v11, %v2311_v32 }
 0x6db   :  { %1928 = vtanh.f32 %v510_v13  ;;  %v1721_v16 = vmul.f32 -1.442695, %v510_v13 }
 0x6dd   :  { %1930 = vpow2.f32 %v1721_v16 }
 0x6e8   :  { %v1929_v15 = vpop.eup %1928 }
 0x6e9   :  { %523 = vrot.lane.b32.xlu1 %v1929_v15, %s2103_s1 }
 0x6ea   :  { %v1931_v17 = vpop.eup %1930 }
 0x6eb   :  { %v514_v18 = vadd.f32 1.0, %v1931_v17 }
 0x6ed   :  { %1932 = vrcp.f32 %v514_v18 }
 0x6fa   :  { %v1933_v19 = vpop.eup %1932 }
 0x6fb   :  { %v521_v23 = vmul.f32 %v1933_v19, %v519_v22 }
 0x75b   :  { %v524_v20 = vpop.permute.xlu1 %523 }
 0x75c   :  { %v526_v21 = vmul.f32 %v1933_v19, %v524_v20 }
 0x75e   :  { %528 = vrot.lane.b32.xlu0 %v526_v21, %s2103_s1 }
 0x7d0   :  { %v529_v24 = vpop.permute.xlu0 %528 }
 0x7d1   :  { %v531_v25 = vadd.f32 %v529_v24, %v521_v23 }
 0x7d3   :  { %1934 = vtanh.f32 %v531_v25  ;;  %v633_v43 = vrot.slane %v531_v25, 7 }
 0x7e0   :  { %v1935_v26 = vpop.eup %1934 }
 0x7e1   :  { %534 = vrot.lane.b32.xlu1 %v1935_v26, %s2103_s1 }
 0x853   :  { %v535_v27 = vpop.permute.xlu1 %534 }
 0x854   :  { %v2354_v28 = vmul.f32 %v1933_v19, %v535_v27 }
 0x856   :  { %v546_v29 = vrot.slane %v2354_v28, 2 }
 0x858   :  { %547 = vrot.lane.b32.xlu0 %v546_v29, %s2104_s2 }
 0x8ca   :  { %v548_v30 = vpop.permute.xlu0 %547 }
 0x8cb   :  { %1837 = vmatmul.mubr.msk.f32.vlgmr.msra.gmra.mxu0 %vm133_vm1, %v548_v30 }
 0x8cc   :  { %1851 = vmatpush3.msra.mxu0 %v2201_v4  ;;  %1858 = vmatprep.mubr.msk.f32.mxu0 %vm2102_vm2, %v2101_v2 }
 0x8cd   :  { %1852 = vmatprep.subr.mxu0 %v2101_v2 }
 0x8ce   :  { %1853 = vmatpush3.msra.mxu0 %v2221_v8 }
 0x8cf   :  { %1854 = vmatprep.subr.mxu0 %v2101_v2 }
 0x8d0   :  { %1855 = vmatpush3.msra.mxu0 %v2237_v10 }
 0x8d1   :  { %1856 = vmatprep.subr.mxu0 %v2101_v2 }
 0x8d2   :  { %1857 = vmatpush3.msra.mxu0 %v2260_v14 }
 0x8d3   :  { %1872 = vmatprep.subr.mxu0 %v2101_v2 }
 0x98b   :  { %v617_v31 = vpop.f32.mrf.mxu0 }
 0x98c   :  { %v622_v33 = vrot.slane %v617_v31, 5 }
 0x98d   :  { %v1838_v34 = vpop.f32.mrf.mxu0 }
 0x98e   :  { %v624_v35 = vadd.f32 %v622_v33, %v2311_v32 }
 0x990   :  { %1936 = vtanh.f32 %v624_v35  ;;  %v1723_v37 = vmul.f32 -1.442695, %v624_v35 }
 0x992   :  { %1938 = vpow2.f32 %v1723_v37 }
 0x99d   :  { %v1937_v36 = vpop.eup %1936 }
 0x99e   :  { %637 = vrot.lane.b32.xlu1 %v1937_v36, %s2103_s1 }
 0x99f   :  { %v1939_v38 = vpop.eup %1938 }
 0x9a0   :  { %v628_v39 = vadd.f32 1.0, %v1939_v38 }
 0x9a2   :  { %1940 = vrcp.f32 %v628_v39 }
 0x9af   :  { %v1941_v40 = vpop.eup %1940 }
 0x9b0   :  { %v635_v44 = vmul.f32 %v1941_v40, %v633_v43 }
 0xa10   :  { %v638_v41 = vpop.permute.xlu1 %637 }
 0xa11   :  { %v640_v42 = vmul.f32 %v1941_v40, %v638_v41 }
 0xa13   :  { %642 = vrot.lane.b32.xlu0 %v640_v42, %s2103_s1 }
 0xa85   :  { %v643_v45 = vpop.permute.xlu0 %642 }
 0xa86   :  { %v645_v46 = vadd.f32 %v643_v45, %v635_v44 }
 0xa88   :  { %1942 = vtanh.f32 %v645_v46  ;;  %v747_v63 = vrot.slane %v645_v46, 7 }
 0xa95   :  { %v1943_v47 = vpop.eup %1942 }
 0xa96   :  { %648 = vrot.lane.b32.xlu1 %v1943_v47, %s2103_s1 }
 0xb08   :  { %v649_v48 = vpop.permute.xlu1 %648 }
 0xb09   :  { %v2373_v49 = vmul.f32 %v1941_v40, %v649_v48 }
 0xb0b   :  { %v660_v50 = vrot.slane %v2373_v49, 3 }
 0xb0d   :  { %661 = vrot.lane.b32.xlu0 %v660_v50, %s2104_s2 }
 0xb7f   :  { %v662_v51 = vpop.permute.xlu0 %661 }
 0xb80   :  { %1848 = vmatmul.mubr.msk.f32.vlgmr.msra.gmra.mxu1 %vm133_vm1, %v662_v51 }
 0xb81   :  { %1862 = vmatpush3.msra.mxu1 %v2201_v4  ;;  %1869 = vmatprep.mubr.msk.f32.mxu1 %vm2102_vm2, %v2101_v2 }
 0xb82   :  { %1863 = vmatprep.subr.mxu1 %v2101_v2 }
 0xb83   :  { %1864 = vmatpush3.msra.mxu1 %v2221_v8 }
 0xb84   :  { %1865 = vmatprep.subr.mxu1 %v2101_v2 }
 0xb85   :  { %1866 = vmatpush3.msra.mxu1 %v2237_v10 }
 0xb86   :  { %1867 = vmatprep.subr.mxu1 %v2101_v2 }
 0xb87   :  { %1868 = vmatpush3.msra.mxu1 %v2260_v14 }
 0xb88   :  { %1883 = vmatprep.subr.mxu1 %v2101_v2 }
 0xc40   :  { %v731_v52 = vpop.f32.mrf.mxu1 }
 0xc41   :  { %v736_v53 = vrot.slane %v731_v52, 4 }
 0xc42   :  { %v1849_v54 = vpop.f32.mrf.mxu1 }
 0xc43   :  { %v738_v55 = vadd.f32 %v736_v53, %v2311_v32 }
 0xc45   :  { %1944 = vtanh.f32 %v738_v55  ;;  %v1725_v57 = vmul.f32 -1.442695, %v738_v55 }
 0xc47   :  { %1946 = vpow2.f32 %v1725_v57 }
 0xc52   :  { %v1945_v56 = vpop.eup %1944 }
 0xc53   :  { %751 = vrot.lane.b32.xlu1 %v1945_v56, %s2103_s1 }
 0xc54   :  { %v1947_v58 = vpop.eup %1946 }
 0xc55   :  { %v742_v59 = vadd.f32 1.0, %v1947_v58 }
 0xc57   :  { %1948 = vrcp.f32 %v742_v59 }
 0xc64   :  { %v1949_v60 = vpop.eup %1948 }
 0xc65   :  { %v749_v0 = vmul.f32 %v1949_v60, %v747_v63 }
 0xcc5   :  { %v752_v61 = vpop.permute.xlu1 %751 }
 0xcc6   :  { %v754_v62 = vmul.f32 %v1949_v60, %v752_v61 }
 0xcc8   :  { %756 = vrot.lane.b32.xlu0 %v754_v62, %s2103_s1 }
 0xd3a   :  { %v757_v1 = vpop.permute.xlu0 %756 }
 0xd3b   :  { %v759_v3 = vadd.f32 %v757_v1, %v749_v0 }
 0xd3d   :  { %1950 = vtanh.f32 %v759_v3 }
 0xd4a   :  { %v1951_v6 = vpop.eup %1950 }
 0xd4b   :  { %762 = vrot.lane.b32.xlu1 %v1951_v6, %s2103_s1 }
 0xdbd   :  { %v763_v7 = vpop.permute.xlu1 %762 }
 0xdbe   :  { %v2392_v9 = vmul.f32 %v1949_v60, %v763_v7 }
 0xdc0   :  { %v774_v11 = vrot.slane %v2392_v9, 4 }
 0xdc2   :  { %775 = vrot.lane.b32.xlu0 %v774_v11, %s2104_s2  ;;  %v1119_v11 = vld [vmem:[%s2671_s5 + $0x10] sm:$0xff] }
 0xe34   :  { %v776_v12 = vpop.permute.xlu0 %775 }
 0xe35   :  { %1859 = vmatmul.mubr.msk.f32.vlgmr.msra.gmra.mxu0 %vm133_vm1, %v776_v12 }
 0xe36   :  { %1873 = vmatpush3.msra.mxu0 %v2201_v4  ;;  %1880 = vmatprep.mubr.msk.f32.mxu0 %vm2102_vm2, %v2101_v2 }
 0xe37   :  { %1874 = vmatprep.subr.mxu0 %v2101_v2 }
 0xe38   :  { %1875 = vmatpush3.msra.mxu0 %v2221_v8 }
 0xe39   :  { %1876 = vmatprep.subr.mxu0 %v2101_v2 }
 0xe3a   :  { %1877 = vmatpush3.msra.mxu0 %v2237_v10 }
 0xe3b   :  { %1878 = vmatprep.subr.mxu0 %v2101_v2 }
 0xe3c   :  { %1879 = vmatpush3.msra.mxu0 %v2260_v14  ;;  %v861_v14 = vrot.slane %v759_v3, 7 }
 0xef5   :  { %v845_v13 = vpop.f32.mrf.mxu0 }
 0xef6   :  { %v850_v15 = vrot.slane %v845_v13, 3 }
 0xef7   :  { %v1860_v16 = vpop.f32.mrf.mxu0 }
 0xef8   :  { %v852_v4 = vadd.f32 %v850_v15, %v2311_v32 }
 0xefa   :  { %1952 = vtanh.f32 %v852_v4  ;;  %v1727_v18 = vmul.f32 -1.442695, %v852_v4 }
 0xefc   :  { %1954 = vpow2.f32 %v1727_v18 }
 0xf07   :  { %v1953_v17 = vpop.eup %1952 }
 0xf08   :  { %865 = vrot.lane.b32.xlu1 %v1953_v17, %s2103_s1 }
 0xf09   :  { %v1955_v8 = vpop.eup %1954 }
 0xf0a   :  { %v856_v19 = vadd.f32 1.0, %v1955_v8  ;;  %v2454_v8 = vld [vmem:[%s2672_s6] sm:$0x1f]  ;;  %s2109_s6 = smov [#allocation10]  }
 0xf0b   :  { %s1659_s22 = sshll.u32 %s2109_s6, 4  ;;  %s1660_s22 = int_to_ptr.vmem [resolvable:$true] %s1659_s22 }
 0xf0c   :  { %1956 = vrcp.f32 %v856_v19  ;;  %v1202_v19 = vlaneseq  ;;  %s2008_s29 = scalar_lea.vmem %s1660_s22, 16  ;;  %s2012_s30 = scalar_lea.vmem %s1660_s22, 32 }
 0xf0d   :  { %p2009_p10 = scmp.ne.s32.totalorder %s1660_s22, %s2008_s29  ;;  %p2013_p11 = scmp.lt.s32.totalorder %s1660_s22, %s1660_s22 }
 0xf0e   :  { %p2014_p12 = scmp.lt.s32.totalorder %s2012_s30, %s2008_s29 }
 0xf10   :  { %p2015_p13 = por %p2014_p12, %p2013_p11 }
 0xf12   :  { %p2016_p0 = pnand %p2015_p13, %p2009_p10 }
 0xf19   :  { %v1957_v20 = vpop.eup %1956 }
 0xf1a   :  { %v863_v22 = vmul.f32 %v1957_v20, %v861_v14 }
 0xf7a   :  { %v866_v10 = vpop.permute.xlu1 %865 }
 0xf7b   :  { %v868_v21 = vmul.f32 %v1957_v20, %v866_v10  ;;  %v1732_v10 = vld [vmem:[%s2671_s5 + $0x20] ss:$0 sm:$0xff] }
 0xf7d   :  { %870 = vrot.lane.b32.xlu0 %v868_v21, %s2103_s1  ;;  %v2463_v21 = vand.u32 127, %v1202_v19 }
 0xfef   :  { %v871_v23 = vpop.permute.xlu0 %870 }
 0xff0   :  { %v873_v24 = vadd.f32 %v871_v23, %v863_v22 }
 0xff2   :  { %1958 = vtanh.f32 %v873_v24  ;;  %v975_v43 = vrot.slane %v873_v24, 7 }
 0xfff   :  { %v1959_v25 = vpop.eup %1958 }
0x1000   :  { %876 = vrot.lane.b32.xlu1 %v1959_v25, %s2103_s1 }
0x1072   :  { %v877_v26 = vpop.permute.xlu1 %876 }
0x1073   :  { %v879_v27 = vmul.f32 %v1957_v20, %v877_v26  ;;  %v2458_v20 = vshrl.u32 %v1202_v19, 7 }
0x1075   :  { %v888_v29 = vrot.slane %v879_v27, 5  ;;  %v1226_v14 = vsub.s32 5, %v2458_v20  ;;  %v1234_v23 = vsub.s32 7, %v2458_v20  ;;  %vm1206_vm3 = vcmp.eq.s32.totalorder %v2458_v20, %v2463_v21 }
0x1077   :  { %889 = vrot.lane.b32.xlu0 %v888_v29, %s2104_s2 }
0x10e9   :  { %v890_v30 = vpop.permute.xlu0 %889 }
0x10ea   :  { %1870 = vmatmul.mubr.msk.f32.vlgmr.msra.gmra.mxu1 %vm133_vm1, %v890_v30 }
0x10eb   :  { %1891 = vmatprep.mubr.msk.f32.mxu1 %vm2102_vm2, %v2101_v2  ;;  %vm1114_vm2 = vcmask 261255  }
0x11aa   :  { %v959_v31 = vpop.f32.mrf.mxu1 }
0x11ab   :  { %v964_v33 = vrot.slane %v959_v31, 2 }
0x11ac   :  { %v1871_v34 = vpop.f32.mrf.mxu1 }
0x11ad   :  { %v966_v35 = vadd.f32 %v964_v33, %v2311_v32  ;;  %v1209_v34 = vsub.s32 1, %v2458_v20 }
0x11af   :  { %1960 = vtanh.f32 %v966_v35  ;;  %v1729_v37 = vmul.f32 -1.442695, %v966_v35 }
0x11b1   :  { %1962 = vpow2.f32 %v1729_v37 }
0x11bc   :  { %v1961_v36 = vpop.eup %1960 }
0x11bd   :  { %979 = vrot.lane.b32.xlu1 %v1961_v36, %s2103_s1  ;;  %v1218_v36 = vsub.s32 3, %v2458_v20 }
0x11be   :  { %v1963_v38 = vpop.eup %1962 }
0x11bf   :  { %v970_v39 = vadd.f32 1.0, %v1963_v38 }
0x11c1   :  { %1964 = vrcp.f32 %v970_v39 }
0x11ce   :  { %v1965_v40 = vpop.eup %1964 }
0x11cf   :  { %v977_v44 = vmul.f32 %v1965_v40, %v975_v43 }
0x122f   :  { %v980_v41 = vpop.permute.xlu1 %979 }
0x1230   :  { %v982_v42 = vmul.f32 %v1965_v40, %v980_v41 }
0x1232   :  { %984 = vrot.lane.b32.xlu0 %v982_v42, %s2103_s1  ;;  %v2106_v42 = vmov -10000.0  }
0x12a4   :  { %v985_v45 = vpop.permute.xlu0 %984 }
0x12a5   :  { %v987_v46 = vadd.f32 %v985_v45, %v977_v44 }
0x12a7   :  { %1966 = vtanh.f32 %v987_v46 }
0x12b4   :  { %v1967_v47 = vpop.eup %1966 }
0x12b5   :  { %990 = vrot.lane.b32.xlu1 %v1967_v47, %s2103_s1 }
0x1327   :  { %v991_v48 = vpop.permute.xlu1 %990 }
0x1328   :  { %v993_v50 = vmul.f32 %v1965_v40, %v991_v48 }
0x132a   :  { %v1002_v51 = vrot.slane %v993_v50, 6 }
0x132c   :  { %1003 = vrot.lane.b32.xlu0 %v1002_v51, %s2104_s2 }
0x139e   :  { %v1004_v52 = vpop.permute.xlu0 %1003 }
0x139f   :  { %1881 = vmatmul.mubr.msk.f32.vlgmr.msra.gmra.mxu0 %vm133_vm1, %v1004_v52 }
0x145f   :  { %v1073_v53 = vpop.f32.mrf.mxu0 }
0x1460   :  { %v1078_v54 = vrot.slane %v1073_v53, 1  ;;  %v2507_v53 = vsub.s32 0, %v2458_v20 }
0x1461   :  { %v1882_v55 = vpop.f32.mrf.mxu0 }
0x1462   :  { %v1080_v56 = vadd.f32 %v1078_v54, %v2311_v32  ;;  %v1089_v32 = vrot.slane %v987_v46, 7 }
0x1464   :  { %1968 = vtanh.f32 %v1080_v56  ;;  %v1731_v58 = vmul.f32 -1.442695, %v1080_v56 }
0x1466   :  { %1970 = vpow2.f32 %v1731_v58 }
0x1471   :  { %v1969_v57 = vpop.eup %1968 }
0x1472   :  { %1093 = vrot.lane.b32.xlu1 %v1969_v57, %s2103_s1 }
0x1473   :  { %v1971_v59 = vpop.eup %1970 }
0x1474   :  { %v1084_v60 = vadd.f32 1.0, %v1971_v59 }
0x1476   :  { %1972 = vrcp.f32 %v1084_v60 }
0x1483   :  { %v1973_v61 = vpop.eup %1972 }
0x1484   :  { %v1091_v0 = vmul.f32 %v1973_v61, %v1089_v32 }
0x14e4   :  { %v1094_v62 = vpop.permute.xlu1 %1093 }
0x14e5   :  { %v1096_v63 = vmul.f32 %v1973_v61, %v1094_v62 }
0x14e7   :  { %1098 = vrot.lane.b32.xlu0 %v1096_v63, %s2103_s1 }
0x14eb   :  { %425 = vrot.lane.b32.xlu0 %v2335_v5, %s2104_s2 }
0x14ef   :  { %653 = vrot.lane.b32.xlu0 %v2373_v49, %s2104_s2  ;;  %v1120_v49 = vld [vmem:[%s2671_s5 + $0x18] sm:$0xff] }
0x14f0   :  { %1884 = vmatpush3.msra.mxu1 %v1120_v49 }
0x14f1   :  { %1885 = vmatprep.subr.mxu1 %v2101_v2 }
0x14f2   :  { %1886 = vmatpush3.msra.mxu1 %v1119_v11 }
0x14f3   :  { %881 = vrot.lane.b32.xlu0 %v879_v27, %s2104_s2  ;;  %1887 = vmatprep.subr.mxu1 %v2101_v2 }
0x1559   :  { %v1099_v1 = vpop.permute.xlu0 %1098 }
0x155a   :  { %v1101_v3 = vadd.f32 %v1099_v1, %v1091_v0 }
0x155c   :  { %1974 = vtanh.f32 %v1101_v3 }
0x155d   :  { %v426_v6 = vpop.permute.xlu0 %425 }
0x155e   :  { %429 = vst.msk [vmem:[#allocation3] sm:$0x2] %vm428_vm4, %v426_v6  ;;  %vm1212_vm4 = vcmask 36864  }
0x155f   :  { %431 = vst.msk [vmem:[#allocation3 + $0x5] sm:$0x2] %vm430_vm5, %v426_v6  ;;  %vm1240_vm5 = vcmp.eq.s32.totalorder %v2458_v20, 3 }
0x1560   :  { %v1241_v43 = vsel %vm1240_vm5, 0.0, %v2106_v42 }
0x1561   :  { %v654_v7 = vpop.permute.xlu0 %653  ;;  %v2500_v44 = vadd.f32 %v1241_v43, %v2454_v8 }
0x1562   :  { %657 = vst.msk [vmem:[#allocation3] sm:$0x8] %vm656_vm6, %v654_v7  ;;  %vm1243_vm6 = vcmask 77864  }
0x1563   :  { %659 = vst.msk [vmem:[#allocation3 + $0x1] sm:$0x8] %vm658_vm7, %v654_v7  ;;  %v1244_v45 = vsel %vm1243_vm6, %v2500_v44, -inf }
0x1564   :  { %v1245_v46 = vrot.slane %v1244_v45, 4 }
0x1565   :  { %v882_v16 = vpop.permute.xlu0 %881 }
0x1566   :  { %v1246_v47 = vmax.f32 %v1244_v45, %v1245_v46 }
0x1568   :  { %v1247_v48 = vrot.slane %v1246_v47, 2 }
0x1569   :  { %v1975_v5 = vpop.eup %1974 }
0x156a   :  { %1104 = vrot.lane.b32.xlu1 %v1975_v5, %s2103_s1 }
0x156e   :  { %539 = vrot.lane.b32.xlu1 %v2354_v28, %s2104_s2  ;;  %v1118_v28 = vld [vmem:[%s2671_s5 + $0x8] sm:$0xff] }
0x156f   :  { %1888 = vmatpush3.msra.mxu1 %v1118_v28 }
0x1570   :  { %1889 = vmatprep.subr.mxu1 %v2101_v2 }
0x1572   :  { %767 = vrot.lane.b32.xlu1 %v2392_v9, %s2104_s2  ;;  %v1117_v9 = vld [vmem:[%s2671_s5] sm:$0xff]  ;;  %s2107_s5 = smov 123  }
0x1573   :  { %1890 = vmatpush3.msra.mxu1 %v1117_v9 }
0x1576   :  { %995 = vrot.lane.b32.xlu1 %v993_v50, %s2104_s2  ;;  %v1248_v50 = vmax.f32 %v1246_v47, %v1247_v48 }
0x1578   :  { %v1249_v51 = vrot.slane %v1248_v50, 1 }
0x157a   :  { %v2504_v52 = vmax.f32 %v1248_v50, %v1249_v51 }
0x15dc   :  { %v1105_v12 = vpop.permute.xlu1 %1104 }
0x15dd   :  { %v1107_v13 = vmul.f32 %v1973_v61, %v1105_v12 }
0x15df   :  { %1109 = vrot.lane.b32.xlu0 %v1107_v13, %s2104_s2 }
0x15e0   :  { %v540_v15 = vpop.permute.xlu1 %539 }
0x15e1   :  { %543 = vst.msk [vmem:[#allocation3] sm:$0x4] %vm542_vm8, %v540_v15 }
0x15e2   :  { %545 = vst.msk [vmem:[#allocation3 + $0x3] sm:$0x4] %vm544_vm9, %v540_v15 }
0x15e3   :  { %885 = vst.msk [vmem:[#allocation3] sm:$0x20] %vm884_vm10, %v882_v16  ;;  %1273 = vrot.lane.b32.xlu0 %v2454_v8, %s2105_s20 }
0x15e4   :  { %887 = vst.msk [vmem:[#allocation3 - $0x3] sm:$0x20] %vm886_vm11, %v882_v16  ;;  %v768_v4 = vpop.permute.xlu1 %767 }
0x15e5   :  { %771 = vst.msk [vmem:[#allocation3] sm:$0x10] %vm770_vm12, %v768_v4 }
0x15e6   :  { %773 = vst.msk [vmem:[#allocation3 - $0x1] sm:$0x10] %vm772_vm13, %v768_v4 }
0x15e8   :  { %v996_v2 = vpop.permute.xlu1 %995 }
0x15e9   :  { %999 = vst.msk [vmem:[#allocation3] sm:$0x40] %vm998_vm14, %v996_v2 }
0x15ea   :  { %1001 = vst.msk [vmem:[#allocation3 - $0x5] sm:$0x40] %vm1000_vm15, %v996_v2 }
0x1651   :  { %v1110_v17 = vpop.permute.xlu0 %1109 }
0x1652   :  { %1113 = vst.msk [vmem:[#allocation3] sm:$0x80] %vm1112_vm0, %v1110_v17 }
0x1653   :  { %1115 = vst.msk [vmem:[#allocation3 - $0x7] sm:$0x80] %vm1114_vm2, %v1110_v17  ;;  %vm1454_vm2 = vcmask 77896  }
0x1655   :  { %v1274_v56 = vpop.permute.xlu0 %1273 }
0x165a   :  { %v1116_v18 = vld [vmem:[#allocation3] sm:$0xff] }
0x165b   :  { %1892 = vmatmul.mubr.msk.f32.vlgmr.msra.gmra.mxu1 %vm133_vm1, %v1116_v18  ;;  %vm1199_vm1 = vcmask 39936  }
0x171b   :  { %v1195_v22 = vpop.f32.mrf.mxu1 }
0x171c   :  { %v2467_v24 = vadd.f32 %v1732_v10, %v1195_v22 }
0x171d   :  { %v1893_v25 = vpop.f32.mrf.mxu1 }
0x171e   :  { %1264 = vrot.lane.b32.xlu1 %v2467_v24, %s2105_s20  ;;  %v1227_v26 = vrot.slane %v2467_v24, %v1226_v14  ;;  %1200 = vst.msk [vmem:[#allocation9] sm:$0xff] %vm1199_vm1, %v2467_v24  ;;  %v1235_v27 = vrot.slane %v2467_v24, %v1234_v23  ;;  %v1210_v35 = vrot.slane %v2467_v24, %v1209_v34  ;;  %v1320_v60 = vrot.slane %v2467_v24, 2 }
0x171f   :  { %v1219_v38 = vrot.slane %v2467_v24, %v1218_v36  ;;  %v1422_v61 = vrot.slane %v2467_v24, 6  ;;  %v1371_v16 = vrot.slane %v2467_v24, 4 }
0x1720   :  { %v1228_v29 = vsel %vm1206_vm3, %v1227_v26, 0.0  ;;  %v1236_v31 = vsel %vm1206_vm3, %v1235_v27, 0.0  ;;  %v1211_v37 = vsel %vm1206_vm3, %v1210_v35, 0.0 }
0x1721   :  { %v1229_v30 = vsel %vm1212_vm4, %v1228_v29, 0.0  ;;  %v2484_v33 = vsel %vm1212_vm4, %v1236_v31, 0.0  ;;  %v1213_v39 = vsel %vm1212_vm4, %v1211_v37, 0.0  ;;  %v1220_v40 = vsel %vm1206_vm3, %v1219_v38, 0.0 }
0x1722   :  { %v1221_v41 = vsel %vm1212_vm4, %v1220_v40, 0.0 }
0x1742   :  { %1214 = vadd.xlane.f32.xlu1 %v1213_v39 }
0x1746   :  { %1222 = vadd.xlane.f32.xlu1 %v1221_v41 }
0x1790   :  { %v1265_v54 = vpop.permute.xlu1 %1264 }
0x1791   :  { %v1267_v55 = vadd.f32 %v1265_v54, %v2504_v52 }
0x1793   :  { %v1271_v57 = vrot.slane %v1267_v55, %v2507_v53 }
0x1795   :  { %v2511_v58 = vadd.f32 %v1274_v56, %v1271_v57 }
0x1797   :  { %v1277_v59 = vsel %vm1243_vm6, %v2511_v58, -inf }
0x1798   :  { %1278 = vmax.xlane.f32.xlu0 %v1277_v59 }
0x17ae   :  { %1321 = vrot.lane.b32.xlu0 %v1320_v60, %s2105_s20 }
0x17cb   :  { %v1215_v62 = vpop.xlane.xlu1 %1214 }
0x17cd   :  { %1230 = vadd.xlane.f32.xlu0 %v1229_v30 }
0x17cf   :  { %v1223_v4 = vpop.xlane.xlu1 %1222 }
0x17e3   :  { %1423 = vrot.lane.b32.xlu0 %v1422_v61, %s2105_s20 }
0x1821   :  { %v2519_v63 = vpop.xlane.xlu0 %1278 }
0x1822   :  { %v1299_v32 = vadd.f32 %v2519_v63, %v1215_v62  ;;  %vm1280_vm13 = vcmp.ge.f32.partialorder %v2511_v58, %v2519_v63  ;;  %v2108_v58 = vmov 9  }
0x1823   :  { %1910 = vset.pattern.permute.xlu0 %v2108_v58  ;;  %1911 = vset.pattern.permute.xlu1 %v2108_v58 }
0x1824   :  { %v2523_v0 = vadd.f32 %v1299_v32, %v2454_v8 }
0x1825   :  { %v1322_v28 = vpop.permute.xlu0 %1321 }
0x1826   :  { %v1301_v1 = vsel %vm1243_vm6, %v2523_v0, -inf }
0x1827   :  { %v1302_v3 = vrot.slane %v1301_v1, 4 }
0x1829   :  { %v1303_v6 = vmax.f32 %v1301_v1, %v1302_v3 }
0x182b   :  { %v1304_v7 = vrot.slane %v1303_v6, 2 }
0x182d   :  { %v1305_v5 = vmax.f32 %v1303_v6, %v1304_v7 }
0x182f   :  { %v1306_v49 = vrot.slane %v1305_v5, 1 }
0x1831   :  { %v2527_v11 = vmax.f32 %v1305_v5, %v1306_v49 }
0x1833   :  { %vm1308_vm7 = vcmp.ge.f32.partialorder %v2523_v0, %v2527_v11  ;;  %v1324_v9 = vadd.f32 %v1322_v28, %v2527_v11 }
0x1835   :  { %v1328_v12 = vrot.slane %v1324_v9, %v2507_v53 }
0x1837   :  { %v2533_v13 = vadd.f32 %v1328_v12, %v1274_v56 }
0x1839   :  { %v1330_v15 = vsel %vm1243_vm6, %v2533_v13, -inf }
0x183a   :  { %1331 = vmax.xlane.f32.xlu1 %v1330_v15 }
0x184b   :  { %1372 = vrot.lane.b32.xlu1 %v1371_v16, %s2105_s20 }
0x1856   :  { %v1231_v34 = vpop.xlane.xlu0 %1230 }
0x185a   :  { %v1424_v46 = vpop.permute.xlu0 %1423 }
0x18c3   :  { %v1332_v2 = vpop.xlane.xlu1 %1331 }
0x18c4   :  { %v1350_v17 = vadd.f32 %v1332_v2, %v1223_v4  ;;  %vm1333_vm14 = vcmp.ge.f32.partialorder %v2533_v13, %v1332_v2 }
0x18c6   :  { %v2540_v18 = vadd.f32 %v1350_v17, %v2454_v8 }
0x18c7   :  { %v1373_v27 = vpop.permute.xlu1 %1372 }
0x18c8   :  { %v1352_v19 = vsel %vm1243_vm6, %v2540_v18, -inf }
0x18c9   :  { %v1353_v10 = vrot.slane %v1352_v19, 4 }
0x18cb   :  { %v1354_v14 = vmax.f32 %v1352_v19, %v1353_v10 }
0x18cd   :  { %v1355_v22 = vrot.slane %v1354_v14, 2 }
0x18cf   :  { %v1356_v23 = vmax.f32 %v1354_v14, %v1355_v22 }
0x18d1   :  { %v1357_v25 = vrot.slane %v1356_v23, 1 }
0x18d3   :  { %v2544_v26 = vmax.f32 %v1356_v23, %v1357_v25 }
0x18d5   :  { %vm1359_vm8 = vcmp.ge.f32.partialorder %v2540_v18, %v2544_v26  ;;  %v1375_v24 = vadd.f32 %v1373_v27, %v2544_v26 }
0x18d7   :  { %v1379_v29 = vrot.slane %v1375_v24, %v2507_v53 }
0x18d9   :  { %v2550_v30 = vadd.f32 %v1379_v29, %v1274_v56 }
0x18db   :  { %v1381_v31 = vsel %vm1243_vm6, %v2550_v30, -inf }
0x18dc   :  { %1382 = vmax.xlane.f32.xlu1 %v1381_v31 }
0x1965   :  { %v2554_v35 = vpop.xlane.xlu1 %1382 }
0x1966   :  { %v1401_v36 = vadd.f32 %v2554_v35, %v1231_v34 }
0x1968   :  { %v1402_v37 = vadd.f32 %v1401_v36, %v2454_v8 }
0x196a   :  { %v1403_v38 = vsel %vm1243_vm6, %v1402_v37, -inf }
0x196b   :  { %v1404_v39 = vrot.slane %v1403_v38, 4 }
0x196d   :  { %v1405_v40 = vmax.f32 %v1403_v38, %v1404_v39 }
0x196f   :  { %v1406_v41 = vrot.slane %v1405_v40, 2 }
0x1971   :  { %v1407_v42 = vmax.f32 %v1405_v40, %v1406_v41 }
0x1973   :  { %v1408_v43 = vrot.slane %v1407_v42, 1 }
0x1975   :  { %v1409_v45 = vmax.f32 %v1407_v42, %v1408_v43 }
0x1977   :  { %v1426_v47 = vadd.f32 %v1424_v46, %v1409_v45  ;;  %vm1410_vm9 = vcmp.ge.f32.partialorder %v1402_v37, %v1409_v45 }
0x1978   :  { %v1411_v54 = vsel %vm1410_vm9, %v2458_v20, 5 }
0x1979   :  { %v1430_v48 = vrot.slane %v1426_v47, %v2507_v53  ;;  %v1412_v55 = vsel %vm1243_vm6, %v1411_v54, 2147483647 }
0x197a   :  { %v1413_v57 = vrot.slane %v1412_v55, 4 }
0x197b   :  { %v1431_v50 = vadd.f32 %v1430_v48, %v1274_v56 }
0x197c   :  { %vm1414_vm10 = vcmp.lt.s32.totalorder %v1412_v55, %v1413_v57 }
0x197d   :  { %v1432_v51 = vsel %vm1243_vm6, %v1431_v50, -inf  ;;  %v1415_v59 = vsel %vm1414_vm10, %v1412_v55, %v1413_v57 }
0x197e   :  { %1433 = vmax.xlane.f32.xlu1 %v1432_v51  ;;  %v1416_v60 = vrot.slane %v1415_v59, 2 }
0x1980   :  { %vm1417_vm11 = vcmp.lt.s32.totalorder %v1415_v59, %v1416_v60 }
0x1981   :  { %v1418_v61 = vsel %vm1417_vm11, %v1415_v59, %v1416_v60 }
0x1982   :  { %v1419_v56 = vrot.slane %v1418_v61, 1 }
0x1984   :  { %vm1420_vm12 = vcmp.lt.s32.totalorder %v1418_v61, %v1419_v56 }
0x1985   :  { %v1421_v62 = vsel %vm1420_vm12, %v1418_v61, %v1419_v56 }
0x198f   :  { %1281 = vrot.lane.b32.xlu1 %v2463_v21, %s2105_s20 }
0x19b3   :  { %1238 = vadd.xlane.f32.xlu1 %v2484_v33 }
0x19c4   :  { %1503 = vrot.lane.b32.xlu1 %v1421_v62, %s2107_s5 }
0x1a07   :  { %v1434_v32 = vpop.xlane.xlu1 %1433 }
0x1a08   :  { %vm1435_vm15 = vcmp.ge.f32.partialorder %v1431_v50, %v1434_v32 }
0x1a0b   :  { %v1282_v1 = vpop.permute.xlu1 %1281 }
0x1a0c   :  { %v1436_v3 = vsel %vm1435_vm15, %v1282_v1, 5  ;;  %v2570_v6 = vsel %vm1280_vm13, %v1282_v1, 5  ;;  %v2572_v33 = vsel %vm1333_vm14, %v1282_v1, 5  ;;  %vm1384_vm13 = vcmp.ge.f32.partialorder %v2550_v30, %v2554_v35 }
0x1a0d   :  { %v1437_v7 = vsel %vm1243_vm6, %v1436_v3, 2147483647  ;;  %v1385_v51 = vsel %vm1384_vm13, %v1282_v1, 5  ;;  %vm1506_vm14 = vcmask 32768  }
0x1a0e   :  { %v1439_v5 = vshra.s32 %v1437_v7, 16  ;;  %v1438_v28 = vand.u32 65535, %v1437_v7  ;;  %v1386_v54 = vsel %vm1243_vm6, %v1385_v51, 2147483647  ;;  %v1360_v7 = vsel %vm1359_vm8, %v2458_v20, 5 }
0x1a0f   :  { %v1388_v55 = vshra.s32 %v1386_v54, 16  ;;  %v1387_v30 = vand.u32 65535, %v1386_v54 }
0x1a10   :  { %v1441_v49 = vcvt.s32.f32 %v1439_v5  ;;  %v1440_v12 = vcvt.s32.f32 %v1438_v28  ;;  %v1361_v5 = vsel %vm1243_vm6, %v1360_v7, 2147483647 }
0x1a11   :  { %v1390_v57 = vcvt.s32.f32 %v1388_v55  ;;  %v1389_v1 = vcvt.s32.f32 %v1387_v30  ;;  %v1362_v28 = vrot.slane %v1361_v5, 4  ;;  %v1335_v55 = vsel %vm1243_vm6, %v2572_v33, 2147483647 }
0x1a12   :  { %1442 = vmin.xlane.f32.xlu0 %v1441_v49 }
0x1a3c   :  { %v1239_v63 = vpop.xlane.xlu1 %1238 }
0x1a3d   :  { %v1452_v13 = vadd.f32 %v1434_v32, %v1239_v63 }
0x1a3f   :  { %v1453_v16 = vadd.f32 %v1452_v13, %v2454_v8 }
0x1a40   :  { %v1504_v60 = vpop.permute.xlu1 %1503 }
0x1a41   :  { %v1455_v4 = vsel %vm1454_vm2, %v1453_v16, -inf }
0x1a42   :  { %v1456_v2 = vrot.slane %v1455_v4, 4 }
0x1a44   :  { %v1457_v17 = vmax.f32 %v1455_v4, %v1456_v2 }
0x1a46   :  { %v1458_v19 = vrot.slane %v1457_v17, 2 }
0x1a48   :  { %v1459_v10 = vmax.f32 %v1457_v17, %v1458_v19 }
0x1a4a   :  { %v1460_v14 = vrot.slane %v1459_v10, 1 }
0x1a4c   :  { %v2577_v22 = vmax.f32 %v1459_v10, %v1460_v14  ;;  %v2609_v14 = vsel %vm1243_vm6, %v2570_v6, 2147483647 }
0x1a4e   :  { %vm1462_vm1 = vcmp.ge.f32.partialorder %v1453_v16, %v2577_v22 }
0x1a4f   :  { %v1463_v23 = vsel %vm1462_vm1, %v2458_v20, 5 }
0x1a50   :  { %v1464_v25 = vsel %vm1454_vm2, %v1463_v23, 2147483647  ;;  %v1286_v23 = vshra.s32 %v2609_v14, 16 }
0x1a51   :  { %v1465_v27 = vrot.slane %v1464_v25, 4 }
0x1a53   :  { %vm1466_vm3 = vcmp.lt.s32.totalorder %v1464_v25, %v1465_v27 }
0x1a54   :  { %v1467_v24 = vsel %vm1466_vm3, %v1464_v25, %v1465_v27  ;;  %v2612_v25 = vcvt.s32.f32 %v1286_v23 }
0x1a55   :  { %v1468_v8 = vrot.slane %v1467_v24, 2 }
0x1a57   :  { %vm1469_vm4 = vcmp.lt.s32.totalorder %v1467_v24, %v1468_v8 }
0x1a58   :  { %v1470_v29 = vsel %vm1469_vm4, %v1467_v24, %v1468_v8 }
0x1a59   :  { %v1471_v31 = vrot.slane %v1470_v29, 1 }
0x1a5b   :  { %vm1472_vm5 = vcmp.lt.s32.totalorder %v1470_v29, %v1471_v31 }
0x1a5c   :  { %v2582_v39 = vsel %vm1472_vm5, %v1470_v29, %v1471_v31 }
0x1a5d   :  { %vm1485_vm9 = vcmp.eq.s32.totalorder %v2458_v20, %v2582_v39 }
0x1a9b   :  { %v1443_v9 = vpop.xlane.xlu0 %1442 }
0x1a9c   :  { %vm1444_vm0 = vcmp.eq.f32.partialorder %v1441_v49, %v1443_v9  ;;  %v1449_v34 = vcvt.f32.s32 %v1443_v9  ;;  %v1309_v49 = vsel %vm1308_vm7, %v2458_v20, 5 }
0x1a9d   :  { %v1445_v15 = vsel %vm1444_vm0, %v1440_v12, inf  ;;  %v1310_v9 = vsel %vm1243_vm6, %v1309_v49, 2147483647 }
0x1a9e   :  { %1446 = vmin.xlane.f32.xlu0 %v1445_v15  ;;  %v1450_v37 = vshll.u32 %v1449_v34, 16  ;;  %v1311_v12 = vrot.slane %v1310_v9, 4 }
0x1aa0   :  { %vm1312_vm1 = vcmp.lt.s32.totalorder %v1310_v9, %v1311_v12 }
0x1aa1   :  { %v1313_v16 = vsel %vm1312_vm1, %v1310_v9, %v1311_v12  ;;  %vm1522_vm1 = vcmp.eq.s32.totalorder %v2463_v21, 5 }
0x1aa2   :  { %v1314_v4 = vrot.slane %v1313_v16, 2 }
0x1aa4   :  { %vm1315_vm4 = vcmp.lt.s32.totalorder %v1313_v16, %v1314_v4 }
0x1aa5   :  { %v1316_v11 = vsel %vm1315_vm4, %v1313_v16, %v1314_v4 }
0x1aa6   :  { %v1317_v17 = vrot.slane %v1316_v11, 1 }
0x1aa8   :  { %vm1318_vm5 = vcmp.lt.s32.totalorder %v1316_v11, %v1317_v17 }
0x1aa9   :  { %v1319_v10 = vsel %vm1318_vm5, %v1316_v11, %v1317_v17 }
0x1b27   :  { %v1447_v36 = vpop.xlane.xlu0 %1446 }
0x1b28   :  { %v1448_v38 = vcvt.f32.s32 %v1447_v36 }
0x1b2a   :  { %v1451_v40 = vadd.s32 %v1450_v37, %v1448_v38 }
0x1b2c   :  { %v1486_v41 = vsel %vm1485_vm9, %v1451_v40, 5  ;;  %vm1530_vm9 = vcmask 1044480  }
0x1b2d   :  { %v1487_v42 = vsel %vm1454_vm2, %v1486_v41, 2147483647  ;;  %vm1363_vm2 = vcmp.lt.s32.totalorder %v1361_v5, %v1362_v28 }
0x1b2e   :  { %v1488_v43 = vrot.slane %v1487_v42, 4  ;;  %v1364_v58 = vsel %vm1363_vm2, %v1361_v5, %v1362_v28  ;;  %vm1497_vm2 = vcmp.eq.s32.totalorder %v2463_v21, 6  ;;  %v1336_v28 = vand.u32 65535, %v1335_v55 }
0x1b2f   :  { %v1365_v26 = vrot.slane %v1364_v58, 2 }
0x1b30   :  { %vm1489_vm10 = vcmp.lt.s32.totalorder %v1487_v42, %v1488_v43 }
0x1b31   :  { %v1490_v45 = vsel %vm1489_vm10, %v1487_v42, %v1488_v43  ;;  %vm1366_vm8 = vcmp.lt.s32.totalorder %v1364_v58, %v1365_v26 }
0x1b32   :  { %v1491_v46 = vrot.slane %v1490_v45, 2  ;;  %v1367_v2 = vsel %vm1366_vm8, %v1364_v58, %v1365_v26 }
0x1b33   :  { %v1368_v0 = vrot.slane %v1367_v2, 1 }
0x1b34   :  { %vm1492_vm11 = vcmp.lt.s32.totalorder %v1490_v45, %v1491_v46 }
0x1b35   :  { %v1493_v47 = vsel %vm1492_vm11, %v1490_v45, %v1491_v46  ;;  %vm1369_vm7 = vcmp.lt.s32.totalorder %v1367_v2, %v1368_v0 }
0x1b36   :  { %v1494_v48 = vrot.slane %v1493_v47, 1  ;;  %v1370_v19 = vsel %vm1369_vm7, %v1367_v2, %v1368_v0  ;;  %vm1562_vm7 = vcmp.eq.s32.totalorder %v2463_v21, 3 }
0x1b38   :  { %vm1495_vm12 = vcmp.lt.s32.totalorder %v1493_v47, %v1494_v48 }
0x1b39   :  { %v1496_v50 = vsel %vm1495_vm12, %v1493_v47, %v1494_v48 }
0x1b3a   :  { %1499 = vperm.xlu0 %1910, %v1496_v50  }
0x1b59   :  { %1391 = vmin.xlane.f32.xlu0 %v1390_v57 }
0x1bb5   :  { %v2590_v59 = vpop.permute.xlu0 %1499 }
0x1bb6   :  { %vm1502_vm15 = vcmp.eq.s32.totalorder %v2463_v21, %v2590_v59 }
0x1bb7   :  { %v1505_v61 = vsel %vm1502_vm15, %v1504_v60, 5 }
0x1bb8   :  { %v1507_v56 = vsel %vm1506_vm14, %v1505_v61, 2147483647  ;;  %v1337_v61 = vshra.s32 %v1335_v55, 16 }
0x1bb9   :  { %v1509_v62 = vshra.s32 %v1507_v56, 16  ;;  %v1508_v15 = vand.u32 65535, %v1507_v56 }
0x1bba   :  { %v1339_v56 = vcvt.s32.f32 %v1337_v61 }
0x1bbb   :  { %v1511_v32 = vcvt.s32.f32 %v1509_v62  ;;  %v1510_v13 = vcvt.s32.f32 %v1508_v15  ;;  %v1338_v15 = vcvt.s32.f32 %v1336_v28 }
0x1bbd   :  { %1512 = vmin.xlane.f32.xlu1 %v1511_v32 }
0x1be2   :  { %v1392_v35 = vpop.xlane.xlu0 %1391 }
0x1be3   :  { %vm1393_vm0 = vcmp.eq.f32.partialorder %v1390_v57, %v1392_v35  ;;  %v1398_v8 = vcvt.f32.s32 %v1392_v35 }
0x1be4   :  { %v1394_v3 = vsel %vm1393_vm0, %v1389_v1, inf  ;;  %vm1480_vm0 = vcmp.eq.s32.totalorder %v2463_v21, 7 }
0x1be5   :  { %1395 = vmin.xlane.f32.xlu1 %v1394_v3  ;;  %v1399_v38 = vshll.u32 %v1398_v8, 16 }
0x1c46   :  { %v1513_v63 = vpop.xlane.xlu1 %1512 }
0x1c47   :  { %vm1514_vm3 = vcmp.eq.f32.partialorder %v1511_v32, %v1513_v63  ;;  %v1519_v24 = vcvt.f32.s32 %v1513_v63 }
0x1c48   :  { %v1515_v18 = vsel %vm1514_vm3, %v1510_v13, inf  ;;  %vm1541_vm3 = vcmp.eq.s32.totalorder %v2463_v21, 4 }
0x1c49   :  { %1516 = vmin.xlane.f32.xlu1 %v1515_v18  ;;  %v1520_v31 = vshll.u32 %v1519_v24, 16 }
0x1c5a   :  { %1544 = vrot.lane.b32.xlu1 %v1370_v19, %s2107_s5 }
0x1c5e   :  { %1583 = vrot.lane.b32.xlu1 %v1319_v10, %s2107_s5 }
0x1c6e   :  { %v1396_v27 = vpop.xlane.xlu1 %1395 }
0x1c6f   :  { %v1397_v36 = vcvt.f32.s32 %v1396_v27 }
0x1c71   :  { %v1400_v40 = vadd.s32 %v1399_v38, %v1397_v36 }
0x1c82   :  { %1289 = vmin.xlane.f32.xlu1 %v2612_v25 }
0x1c93   :  { %1482 = vperm.xlu1 %1911, %v2582_v39  }
0x1cd2   :  { %v1517_v29 = vpop.xlane.xlu1 %1516 }
0x1cd3   :  { %v1518_v34 = vcvt.f32.s32 %v1517_v29 }
0x1cd5   :  { %v1521_v37 = vadd.s32 %v1520_v31, %v1518_v34 }
0x1cd6   :  { %v1545_v50 = vpop.permute.xlu1 %1544 }
0x1cd7   :  { %v1527_v6 = vrot.slane %v1521_v37, %v2507_v53 }
0x1cd9   :  { %vm1528_vm10 = vcmp.eq.s32.totalorder %v2458_v20, %v1527_v6 }
0x1cda   :  { %v1529_v41 = vsel %vm1528_vm10, %v1400_v40, 5  ;;  %v1584_v62 = vpop.permute.xlu1 %1583 }
0x1cdb   :  { %v1531_v42 = vsel %vm1530_vm9, %v1529_v41, 2147483647 }
0x1cdc   :  { %v1532_v43 = vrot.slane %v1531_v42, 4 }
0x1cde   :  { %vm1533_vm11 = vcmp.lt.s32.totalorder %v1531_v42, %v1532_v43 }
0x1cdf   :  { %v1534_v39 = vsel %vm1533_vm11, %v1531_v42, %v1532_v43 }
0x1ce0   :  { %v1535_v45 = vrot.slane %v1534_v39, 2 }
0x1ce2   :  { %vm1536_vm12 = vcmp.lt.s32.totalorder %v1534_v39, %v1535_v45 }
0x1ce3   :  { %v1537_v46 = vsel %vm1536_vm12, %v1534_v39, %v1535_v45  ;;  %vm1580_vm12 = vcmp.eq.s32.totalorder %v2463_v21, 2 }
0x1ce4   :  { %v1538_v47 = vrot.slane %v1537_v46, 1 }
0x1ce6   :  { %vm1539_vm13 = vcmp.lt.s32.totalorder %v1537_v46, %v1538_v47 }
0x1ce7   :  { %v1540_v48 = vsel %vm1539_vm13, %v1537_v46, %v1538_v47  ;;  %v1285_v47 = vand.u32 65535, %v2609_v14 }
0x1ce8   :  { %vm1543_vm15 = vcmp.eq.s32.totalorder %v2463_v21, %v1540_v48 }
0x1ce9   :  { %v1546_v51 = vsel %vm1543_vm15, %v1545_v50, 5  ;;  %v1287_v50 = vcvt.s32.f32 %v1285_v47 }
0x1cea   :  { %v1547_v54 = vsel %vm1506_vm14, %v1546_v51, 2147483647 }
0x1ceb   :  { %v1549_v57 = vshra.s32 %v1547_v54, 16  ;;  %v1548_v7 = vand.u32 65535, %v1547_v54 }
0x1ced   :  { %v1551_v60 = vcvt.s32.f32 %v1549_v57  ;;  %v1550_v49 = vcvt.s32.f32 %v1548_v7 }
0x1cef   :  { %1552 = vmin.xlane.f32.xlu0 %v1551_v60 }
0x1cf3   :  { %1340 = vmin.xlane.f32.xlu0 %v1339_v56 }
0x1d0b   :  { %v2623_v32 = vpop.xlane.xlu1 %1289 }
0x1d0c   :  { %v1296_v61 = vcvt.f32.s32 %v2623_v32 }
0x1d0f   :  { %v1483_v30 = vpop.permute.xlu1 %1482 }
0x1d10   :  { %v1484_v35 = vsel %vm1480_vm0, %v1483_v30, 0  ;;  %vm1251_vm0 = vcmp.ge.f32.partialorder %v2500_v44, %v2504_v52 }
0x1d11   :  { %v1501_v33 = vsel %vm1497_vm2, %v2590_v59, %v1484_v35  ;;  %v1252_v41 = vsel %vm1251_vm0, %v2458_v20, 5  ;;  %v1297_v35 = vshll.u32 %v1296_v61, 16 }
0x1d12   :  { %v1523_v1 = vsel %vm1522_vm1, %v1521_v37, %v1501_v33  ;;  %v1253_v42 = vsel %vm1243_vm6, %v1252_v41, 2147483647  ;;  %vm1291_vm1 = vcmp.eq.f32.partialorder %v2612_v25, %v2623_v32 }
0x1d13   :  { %v1542_v3 = vsel %vm1541_vm3, %v1540_v48, %v1523_v1  ;;  %v1254_v39 = vrot.slane %v1253_v42, 4  ;;  %v1292_v51 = vsel %vm1291_vm1, %v1287_v50, inf }
0x1d15   :  { %vm1255_vm3 = vcmp.lt.s32.totalorder %v1253_v42, %v1254_v39 }
0x1d16   :  { %v1256_v44 = vsel %vm1255_vm3, %v1253_v42, %v1254_v39 }
0x1d17   :  { %v1257_v52 = vrot.slane %v1256_v44, 2 }
0x1d78   :  { %v1553_v5 = vpop.xlane.xlu0 %1552 }
0x1d79   :  { %vm1554_vm8 = vcmp.eq.f32.partialorder %v1551_v60, %v1553_v5  ;;  %v1559_v63 = vcvt.f32.s32 %v1553_v5 }
0x1d7a   :  { %v1555_v9 = vsel %vm1554_vm8, %v1550_v49, inf  ;;  %vm1258_vm8 = vcmp.lt.s32.totalorder %v1256_v44, %v1257_v52 }
0x1d7b   :  { %1556 = vmin.xlane.f32.xlu0 %v1555_v9  ;;  %v1560_v18 = vshll.u32 %v1559_v63, 16  ;;  %v1259_v54 = vsel %vm1258_vm8, %v1256_v44, %v1257_v52 }
0x1d7c   :  { %v1341_v12 = vpop.xlane.xlu0 %1340  ;;  %v1260_v55 = vrot.slane %v1259_v54, 1 }
0x1d7d   :  { %vm1342_vm4 = vcmp.eq.f32.partialorder %v1339_v56, %v1341_v12  ;;  %v1347_v26 = vcvt.f32.s32 %v1341_v12 }
0x1d7e   :  { %v1343_v58 = vsel %vm1342_vm4, %v1338_v15, inf  ;;  %vm1261_vm6 = vcmp.lt.s32.totalorder %v1259_v54, %v1260_v55 }
0x1d7f   :  { %1344 = vmin.xlane.f32.xlu0 %v1343_v58  ;;  %v1348_v2 = vshll.u32 %v1347_v26, 16  ;;  %v1262_v57 = vsel %vm1261_vm6, %v1259_v54, %v1260_v55 }
0x1e04   :  { %v1557_v13 = vpop.xlane.xlu0 %1556 }
0x1e05   :  { %v1558_v16 = vcvt.f32.s32 %v1557_v13 }
0x1e07   :  { %v1561_v59 = vadd.s32 %v1560_v18, %v1558_v16 }
0x1e08   :  { %v1345_v4 = vpop.xlane.xlu0 %1344 }
0x1e09   :  { %v1563_v0 = vsel %vm1562_vm7, %v1561_v59, %v1542_v3  ;;  %v1567_v11 = vrot.slane %v1561_v59, %v2507_v53  ;;  %v1346_v17 = vcvt.f32.s32 %v1345_v4 }
0x1e0b   :  { %vm1568_vm5 = vcmp.eq.s32.totalorder %v2458_v20, %v1567_v11  ;;  %v1349_v19 = vadd.s32 %v1348_v2, %v1346_v17 }
0x1e0d   :  { %v1569_v10 = vsel %vm1568_vm5, %v1349_v19, 5 }
0x1e0e   :  { %v1570_v23 = vsel %vm1530_vm9, %v1569_v10, 2147483647 }
0x1e0f   :  { %v1571_v27 = vrot.slane %v1570_v23, 4 }
0x1e11   :  { %vm1572_vm10 = vcmp.lt.s32.totalorder %v1570_v23, %v1571_v27 }
0x1e12   :  { %v1573_v24 = vsel %vm1572_vm10, %v1570_v23, %v1571_v27  ;;  %vm1601_vm10 = vcmp.eq.s32.totalorder %v2463_v21, 1 }
0x1e13   :  { %v1574_v8 = vrot.slane %v1573_v24, 2 }
0x1e15   :  { %vm1575_vm11 = vcmp.lt.s32.totalorder %v1573_v24, %v1574_v8 }
0x1e16   :  { %v1576_v29 = vsel %vm1575_vm11, %v1573_v24, %v1574_v8  ;;  %vm1619_vm11 = vcmp.eq.s32.totalorder %v2463_v21, 0 }
0x1e17   :  { %v1577_v31 = vrot.slane %v1576_v29, 1 }
0x1e19   :  { %vm1578_vm13 = vcmp.lt.s32.totalorder %v1576_v29, %v1577_v31 }
0x1e1a   :  { %v1579_v34 = vsel %vm1578_vm13, %v1576_v29, %v1577_v31  ;;  %vm1640_vm13 = vcmask 57344  }
0x1e1b   :  { %vm1582_vm15 = vcmp.eq.s32.totalorder %v2463_v21, %v1579_v34  ;;  %v1581_v36 = vsel %vm1580_vm12, %v1579_v34, %v1563_v0 }
0x1e1c   :  { %v1585_v37 = vsel %vm1582_vm15, %v1584_v62, 5 }
0x1e1d   :  { %v1586_v38 = vsel %vm1506_vm14, %v1585_v37, 2147483647 }
0x1e1e   :  { %v1588_v6 = vshra.s32 %v1586_v38, 16  ;;  %v1587_v43 = vand.u32 65535, %v1586_v38 }
0x1e20   :  { %v1590_v40 = vcvt.s32.f32 %v1588_v6  ;;  %v1589_v46 = vcvt.s32.f32 %v1587_v43 }
0x1e22   :  { %1591 = vmin.xlane.f32.xlu0 %v1590_v40 }
0x1eab   :  { %v1592_v45 = vpop.xlane.xlu0 %1591 }
0x1eac   :  { %vm1593_vm2 = vcmp.eq.f32.partialorder %v1590_v40, %v1592_v45  ;;  %v1598_v14 = vcvt.f32.s32 %v1592_v45 }
0x1ead   :  { %v1594_v48 = vsel %vm1593_vm2, %v1589_v46, inf }
0x1eae   :  { %1595 = vmin.xlane.f32.xlu0 %v1594_v48  ;;  %v1599_v56 = vshll.u32 %v1598_v14, 16 }
0x1eb2   :  { %1293 = vmin.xlane.f32.xlu0 %v1292_v51 }
0x1ec8   :  { %1622 = vrot.lane.b32.xlu0 %v1262_v57, %s2107_s5 }
0x1f37   :  { %v1596_v60 = vpop.xlane.xlu0 %1595 }
0x1f38   :  { %v1597_v62 = vcvt.f32.s32 %v1596_v60 }
0x1f3a   :  { %v1600_v25 = vadd.s32 %v1599_v56, %v1597_v62 }
0x1f3b   :  { %v1294_v30 = vpop.xlane.xlu0 %1293 }
0x1f3c   :  { %v1606_v33 = vrot.slane %v1600_v25, %v2507_v53  ;;  %v1295_v1 = vcvt.f32.s32 %v1294_v30 }
0x1f3e   :  { %vm1607_vm4 = vcmp.eq.s32.totalorder %v2458_v20, %v1606_v33  ;;  %v1298_v3 = vadd.s32 %v1297_v35, %v1295_v1  ;;  %v1602_v20 = vsel %vm1601_vm10, %v1600_v25, %v1581_v36 }
0x1f3f   :  { %v1623_v53 = vpop.permute.xlu0 %1622 }
0x1f40   :  { %v1608_v7 = vsel %vm1607_vm4, %v1298_v3, 5 }
0x1f41   :  { %v1609_v5 = vsel %vm1530_vm9, %v1608_v7, 2147483647 }
0x1f42   :  { %v1610_v49 = vrot.slane %v1609_v5, 4 }
0x1f44   :  { %vm1611_vm7 = vcmp.lt.s32.totalorder %v1609_v5, %v1610_v49 }
0x1f45   :  { %v1612_v28 = vsel %vm1611_vm7, %v1609_v5, %v1610_v49 }
0x1f46   :  { %v1613_v9 = vrot.slane %v1612_v28, 2 }
0x1f48   :  { %vm1614_vm5 = vcmp.lt.s32.totalorder %v1612_v28, %v1613_v9 }
0x1f49   :  { %v1615_v32 = vsel %vm1614_vm5, %v1612_v28, %v1613_v9 }
0x1f4a   :  { %v1616_v12 = vrot.slane %v1615_v32, 1 }
0x1f4c   :  { %vm1617_vm12 = vcmp.lt.s32.totalorder %v1615_v32, %v1616_v12 }
0x1f4d   :  { %v1618_v15 = vsel %vm1617_vm12, %v1615_v32, %v1616_v12 }
0x1f4e   :  { %vm1621_vm15 = vcmp.eq.s32.totalorder %v2463_v21, %v1618_v15  ;;  %v1620_v58 = vsel %vm1619_vm11, %v1618_v15, %v1602_v20 }
0x1f4f   :  { %v1624_v63 = vsel %vm1621_vm15, %v1623_v53, 5  ;;  %1641 = vst.msk [vmem:[#allocation10] sm:$0x1] %vm1640_vm13, %v1620_v58 }
0x1f50   :  { %v1625_v13 = vsel %vm1506_vm14, %v1624_v63, 2147483647 }
0x1f51   :  { %v1627_v18 = vshra.s32 %v1625_v13, 16  ;;  %v1626_v16 = vand.u32 65535, %v1625_v13 }
0x1f53   :  { %v1629_v26 = vcvt.s32.f32 %v1627_v18  ;;  %v1628_v4 = vcvt.s32.f32 %v1626_v16 }
0x1f55   :  { %1630 = vmin.xlane.f32.xlu0 %v1629_v26 }
0x1fde   :  { %v1631_v59 = vpop.xlane.xlu0 %1630 }
0x1fdf   :  { %vm1632_vm9 = vcmp.eq.f32.partialorder %v1629_v26, %v1631_v59 }
0x1fe0   :  { %v1633_v2 = vsel %vm1632_vm9, %v1628_v4, inf }
0x1fe1   :  { %1634 = vmin.xlane.f32.xlu1 %v1633_v2 }
0x1ff2   :  { %1475 = vrot.lane.b32.xlu1 %v2577_v22, %s2111_s28 }
0x1ff3   :  { %2019 = shalt.err (!%p2016_p0)
}
0x1ff4   :  { %1662 = dma.vmem_to_hbm [thread:$0]  %s1660_s22, 16, %s2674_s8, [#allocation11]  }
0x1ff5   :  { %s2028_s1 = scalar_lea.vmem %s1650_s24, 128  ;;  %p2033_p2 = scmp.lt.s32.totalorder %s1650_s24, %s1650_s24 }
0x1ff6   :  { %p2029_p1 = scmp.ne.s32.totalorder %s1650_s24, %s2028_s1  ;;  %p2034_p3 = scmp.lt.s32.totalorder %s2028_s1, %s2028_s1 }
0x1ff8   :  { %p2035_p4 = por %p2034_p3, %p2033_p2 }
0x1ffa   :  { %p2036_p5 = pnand %p2035_p4, %p2029_p1 }
0x1ffc   :  { %2039 = shalt.err (!%p2036_p5)
}
0x1ffd   :  { %1652 = dma.vmem_to_hbm [thread:$0]  %s1650_s24, 128, %s2673_s7, [#allocation8]   ;;  %v1637_v21 = vcvt.f32.s32 %v1631_v59  ;;  %vm1478_vm14 = vcmask 0  }
0x1ffe   :  { %s2112_s2 = smov [#allocation12]   ;;  %s2113_s4 = smov [#allocation13]  }
0x1fff   :  { %s1669_s15 = sshll.u32 %s2112_s2, 4  ;;  %v1638_v0 = vshll.u32 %v1637_v21, 16  ;;  %s1679_s13 = sshll.u32 %s2113_s4, 4  ;;  %s1670_s15 = int_to_ptr.vmem [resolvable:$true] %s1669_s15  ;;  %s1680_s13 = int_to_ptr.vmem [resolvable:$true] %s1679_s13 }
0x2000   :  { %s2048_s8 = scalar_lea.vmem %s1670_s15, 16  ;;  %s2052_s16 = scalar_lea.vmem %s1670_s15, 32 }
0x2001   :  { %p2049_p6 = scmp.ne.s32.totalorder %s1670_s15, %s2048_s8  ;;  %p2053_p7 = scmp.lt.s32.totalorder %s1670_s15, %s1670_s15 }
0x2002   :  { %p2054_p8 = scmp.lt.s32.totalorder %s2052_s16, %s2048_s8 }
0x2004   :  { %p2055_p9 = por %p2054_p8, %p2053_p7 }
0x2006   :  { %p2056_p10 = pnand %p2055_p9, %p2049_p6 }
0x206a   :  { %v1635_v22 = vpop.xlane.xlu1 %1634 }
0x206b   :  { %v1636_v11 = vcvt.f32.s32 %v1635_v22 }
0x206d   :  { %v1639_v17 = vadd.s32 %v1638_v0, %v1636_v11 }
0x206e   :  { %v1476_v19 = vpop.permute.xlu1 %1475 }
0x206f   :  { %1479 = vst.msk [vmem:[#allocation12] sm:$0x1] %vm1478_vm14, %v1476_v19  ;;  %1642 = vst.msk [vmem:[#allocation13] sm:$0x1] %vm1478_vm14, %v1639_v17 }
0x2070   :  { %2059 = shalt.err (!%p2056_p10)
}
0x2071   :  { %1672 = dma.vmem_to_hbm [thread:$0]  %s1670_s15, 16, %s2675_s9, [#allocation11]  }
0x2072   :  { %s2068_s17 = scalar_lea.vmem %s1680_s13, 16  ;;  %s2072_s18 = scalar_lea.vmem %s1680_s13, 32 }
0x2073   :  { %p2069_p11 = scmp.ne.s32.totalorder %s1680_s13, %s2068_s17  ;;  %p2073_p12 = scmp.lt.s32.totalorder %s1680_s13, %s1680_s13 }
0x2074   :  { %p2074_p13 = scmp.lt.s32.totalorder %s2072_s18, %s2068_s17 }
0x2076   :  { %p2075_p0 = por %p2074_p13, %p2073_p12 }
0x2078   :  { %p2076_p1 = pnand %p2075_p0, %p2069_p11 }
0x207a   :  { %2079 = shalt.err (!%p2076_p1)
}
0x207b   :  { %1682 = dma.vmem_to_hbm [thread:$0]  %s1680_s13, 16, %s2676_s10, [#allocation14]  }
0x207c   :  { %2092 = dma.done.wait [#allocation8], 128  }
0x207d   :  { %2093 = vsyncadd [#allocation8], 4294967168 }
0x207e   :  { %2094 = dma.done.wait [#allocation11], 32  }
0x207f   :  { %2095 = vsyncadd [#allocation11], 4294967264 }
0x2080   :  { %2096 = dma.done.wait [#allocation14], 16  }
0x2081   :  { %2097 = vsyncadd [#allocation14], 4294967280 }
0x2082   :  { %1695 = vsyncpa [#allocation7], 1 }
0x2083   :  { %1696 = vsyncpa [#allocation8], 1 }
0x2084   :  { %1697 = vsyncpa [#allocation11], 1 }
0x2085   :  { %1698 = vsyncpa [#allocation14], 1 }

</bundles_post_ra>
